<compile_context>
chip_gen: v6e
topology: v6e:2x2x1
jax: 0.10.0
libtpu: 0.0.40
codegen_flags: <defaults>
</compile_context>

<pallas_src>
import numpy as np
import jax
import jax.numpy as jnp
from jax import lax
from jax.experimental import pallas as pl
from jax.experimental.pallas import tpu as pltpu


# ----------------------------------------------------------------------------
# DFT matrices (exact rfft / irfft as matmuls, T even)
# ----------------------------------------------------------------------------
def dft_mats(T):
    H = T // 2 + 1
    t = np.arange(T)[:, None].astype(np.float64)
    k = np.arange(H)[None, :].astype(np.float64)
    ang = 2.0 * np.pi * t * k / T                        # [T, H]
    cosF = np.cos(ang)                                   # Re = x @ cosF
    nsinF = -np.sin(ang)                                 # Im = x @ nsinF
    wk = np.full((H,), 2.0)
    wk[0] = 1.0
    if T % 2 == 0:
        wk[-1] = 1.0
    icosF = (wk[:, None] / T) * np.cos(ang.T)            # [H, T]
    insinF = -(wk[:, None] / T) * np.sin(ang.T)          # [H, T]
    f32 = lambda a: jnp.asarray(a, dtype=jnp.float32)
    return f32(cosF), f32(nsinF), f32(icosF), f32(insinF)


# ----------------------------------------------------------------------------
# Parameter init (deterministic, xavier-normal style)
# ----------------------------------------------------------------------------
def xavier(key, shape):
    fan_in, fan_out = shape[-2], shape[-1]
    std = np.sqrt(2.0 / (fan_in + fan_out))
    return jax.random.normal(key, shape, dtype=jnp.float32) * std


def init_params(key, cfg):
    C, N, T, P, E = (cfg['c_in'], cfg['n_nodes'], cfg['inp_len'],
                     cfg['pred_len'], cfg['emb_dim'])
    H = T // 2 + 1
    keys = jax.random.split(key, 32)
    ki = iter(keys)
    p = {
        'global_graph_c': xavier(next(ki), (C, C)),
        'latent_graph_c': xavier(next(ki), (C, H)),
        'latent_global_c': xavier(next(ki), (H, T)),   # used only by training loss
        'global_graph_t': xavier(next(ki), (C, C)),
        'latent_graph_t': xavier(next(ki), (C, H)),
        'latent_global_t': xavier(next(ki), (H, T)),   # used only by training loss
        'fconv1_w': xavier(next(ki), (C, T, T)),       # TODO(synk): FreqConv stand-in
        'fconv2_w': xavier(next(ki), (C, P, P)),
        'idp_w': xavier(next(ki), (C, T, P)),          # TODO(synk): Indepent_Linear stand-in
        'idp_b': jnp.zeros((C, P), dtype=jnp.float32),
        'in_layers': [], 'out_layers': [],
    }
    for _ in range(cfg['sta_layers']):
        p['in_layers'].append({
            'mlp': {'w1': xavier(next(ki), (T, T)), 'w2': xavier(next(ki), (T, T))},
            'attn': {'uq': xavier(next(ki), (C, E)), 'uk': xavier(next(ki), (C, E))},
        })
        p['out_layers'].append({
            'mlp': {'w1': xavier(next(ki), (P, P)), 'w2': xavier(next(ki), (P, P))},
            'attn': {'uq': xavier(next(ki), (C, E)), 'uk': xavier(next(ki), (C, E))},
        })
    return p


# ----------------------------------------------------------------------------
# Constant folding (run once, eval mode).  No eye(N) Kronecker anywhere.
# ----------------------------------------------------------------------------
def fold_params(params, cfg):
    C, N, T, P = cfg['c_in'], cfg['n_nodes'], cfg['inp_len'], cfg['pred_len']
    CT, CP = C * T, C * P
    cosF, nsinF, icosF, insinF = dft_mats(T)

    gc, lc = params['global_graph_c'], params['latent_graph_c']
    gt, lt = params['global_graph_t'], params['latent_graph_t']
    # freq_attn_in folded: y[b,l,n,s] = sum_{c,t} x[b,c,n,t] * K[(c,t),(l,s)]
    Ac = jnp.einsum('th,lh,hs->lts', cosF, lc, icosF)          # [C, T, T]
    At = jnp.einsum('th,lh,hs->lts', nsinF, lt, insinF)        # [C, T, T]
    K = (jnp.einsum('cl,lts->ctls', gc, Ac)
         + jnp.einsum('cl,lts->ctls', gt, At)).reshape(CT, CT)
    mfreq = K + jnp.eye(CT, dtype=jnp.float32)   # fold residual: x_c = x + freq_attn(x)

    def bd_c(w):   # per-channel mixing [C, Ti, To] -> block-diag over C [C*Ti, C*To]
        Cc, Ti, To = w.shape
        return jnp.einsum('cts,cd->ctds', w,
                          jnp.eye(Cc, dtype=w.dtype)).reshape(Cc * Ti, Cc * To)

    bf16 = lambda a: a.astype(jnp.bfloat16)

    def stack_layers(layers, t_len):
        # gated_mlp time-mix weights (shared over channels) -> block-diag over C.
        w1 = jnp.stack([bd_c(jnp.broadcast_to(lp['mlp']['w1'], (C, t_len, t_len)))
                        for lp in layers])
        w2 = jnp.stack([bd_c(jnp.broadcast_to(lp['mlp']['w2'], (C, t_len, t_len)))
                        for lp in layers])
        # stattn stand-in only needs Suu = uq @ uk^T (q.k = z^T Suu z).
        suu = jnp.stack([lp['attn']['uq'] @ lp['attn']['uk'].T for lp in layers])
        return bf16(w1), bf16(w2), suu

    in_w1, in_w2, in_suu = stack_layers(params['in_layers'], T)
    out_w1, out_w2, out_suu = stack_layers(params['out_layers'], P)

    return dict(
        freq_attn_M=bf16(mfreq),                       # [CT, CT] bf16
        in_w1=in_w1, in_w2=in_w2, in_suu=in_suu,       # [L,CT,CT] bf16, [L,C,C] f32
        fconv1_bd=bf16(bd_c(params['fconv1_w'])),      # [CT, CT]
        idp_bd=bf16(bd_c(params['idp_w'])),            # [CT, CP]
        idp_b=params['idp_b'].reshape(1, CP),          # [1, CP] f32
        out_w1=out_w1, out_w2=out_w2, out_suu=out_suu, # [L,CP,CP] bf16, [L,C,C] f32
        fconv2_bd=bf16(bd_c(params['fconv2_w'])),      # [CP, CP]
    )


# ----------------------------------------------------------------------------
# Single fused forward kernel (grid-less, everything VMEM resident)
# ----------------------------------------------------------------------------
def forward(folded, x, x_mark, y_mark, *, emb_dim):
    B, C, N, T = x.shape
    L = folded['in_w1'].shape[0]
    CP = folded['fconv2_bd'].shape[0]
    P = CP // C
    CT, BN = C * T, B * N
    inv_sqrt_e = 1.0 / float(np.sqrt(emb_dim))

    def kernel(x_ref, mfreq_ref, inw1_ref, inw2_ref, insuu_ref,
               fc1_ref, idp_ref, idpb_ref,
               outw1_ref, outw2_ref, outsuu_ref, fc2_ref, o_ref):
        f32, bf16 = jnp.float32, jnp.bfloat16

        def bdot(a, w):                   # bf16 MXU matmul, f32 accumulate
            return jnp.dot(a.astype(bf16), w, preferred_element_type=f32)

        def gelu_tanh(v):                 # TODO(synk): original F.gelu is exact (erf)
            k0 = 0.7978845608028654       # sqrt(2/pi)
            return 0.5 * v * (1.0 + jnp.tanh(k0 * (v + 0.044715 * v * v * v)))

        def eye_mask(n):
            r = lax.broadcasted_iota(jnp.int32, (n, n), 0)
            c = lax.broadcasted_iota(jnp.int32, (n, n), 1)
            return (r == c).astype(f32)

        def sta_stack(act, w1_ref, w2_ref, suu_ref, t_len):
            # act: [BN, C*t_len]. L x (gated_mlp -> stattn diag scale).
            # TODO(synk): gated_mlp / stattn_layer sources not provided;
            # deterministic stand-ins (gated time-MLP; node-mean QK^T softmax).
            ct = C * t_len
            eye_t = eye_mask(t_len)
            for l in range(L):
                h = bdot(act, w1_ref[l])
                g = 1.0 / (1.0 + jnp.exp(-bdot(act, w2_ref[l])))
                act = act + h * g                                   # gated_mlp
                suu = suu_ref[l]                                    # [C, C]
                rows = []
                for b in range(B):
                    xb = act[b * N:(b + 1) * N, :]                  # [N, ct]
                    zb = jnp.mean(xb, axis=0, keepdims=True)        # [1, ct]  node mean
                    zb2 = jnp.concatenate(
                        [zb[:, ci * t_len:(ci + 1) * t_len] for ci in range(C)],
                        axis=0)                                     # [C, t_len]
                    a = jnp.dot(suu, zb2, preferred_element_type=f32)        # [C, t]
                    wb = jnp.dot(zb2.T, a, preferred_element_type=f32)       # [t, t]
                    wb = wb * inv_sqrt_e
                    wb = wb - jnp.max(wb, axis=-1, keepdims=True)
                    ew = jnp.exp(wb)
                    wsm = ew / jnp.sum(ew, axis=-1, keepdims=True)  # softmax
                    diag = jnp.sum(wsm * eye_t, axis=0, keepdims=True)       # [1, t]
                    scale = 1.0 + gelu_tanh(diag)       # einsum('bcnt,btt->bcnt') + x_c
                    col = jnp.concatenate([scale] * C, axis=1)               # [1, ct]
                    rows.append(jnp.broadcast_to(col, (N, ct)))
                act = act * jnp.concatenate(rows, axis=0)
            return act

        x_in = x_ref[...]                                   # [BN, CT] f32
        # 1) x_c = x + freq_attn_in(x)   (residual identity folded into mfreq)
        xc = bdot(x_in, mfreq_ref[...])                     # [BN, CT]
        # 2) input spatio-temporal stack.
        xc = sta_stack(xc, inw1_ref, inw2_ref, insuu_ref, T)
        # 3) fconv1 (stand-in): h_x = x + per-channel time mix of x_c.
        hx = x_in + bdot(xc, fc1_ref[...])                  # [BN, CT]
        # 4) Indepent_Linear (stand-in): per-channel T->P linear + bias.
        hy = bdot(hx, idp_ref[...]) + idpb_ref[...]         # [BN, CP]
        # 5) output spatio-temporal stack.
        yc = sta_stack(hy, outw1_ref, outw2_ref, outsuu_ref, P)
        # 6) fconv2 (stand-in): y = h_y + per-channel pred-time mix of y_c.
        o_ref[...] = hy + bdot(yc, fc2_ref[...])

    # Lane-dense layout: rows = (b, n), columns = (c, t).
    x_flat = x.transpose(0, 2, 1, 3).reshape(BN, CT)

    vmem_spec = pl.BlockSpec(memory_space=pltpu.MemorySpace.VMEM)
    y_flat = pl.pallas_call(
        kernel,
        out_shape=jax.ShapeDtypeStruct((BN, CP), jnp.float32),
        in_specs=[vmem_spec] * 12,
        out_specs=vmem_spec,
        compiler_params=pltpu.CompilerParams(vmem_limit_bytes=32 * 1024 * 1024),
    )(x_flat, folded['freq_attn_M'],
      folded['in_w1'], folded['in_w2'], folded['in_suu'],
      folded['fconv1_bd'], folded['idp_bd'], folded['idp_b'],
      folded['out_w1'], folded['out_w2'], folded['out_suu'],
      folded['fconv2_bd'])

    y = y_flat.reshape(B, N, C, P).transpose(0, 2, 1, 3)    # [B, C, N, P]
    loss = jnp.zeros((), dtype=jnp.float32)  # eval mode: training spectral loss omitted
    return y, loss


# ----------------------------------------------------------------------------
if __name__ == "__main__":
    cfg = dict(c_in=4, c_out=4, c_date=4, n_nodes=8, inp_len=16, pred_len=8,
               emb_dim=8, sta_layers=1, dropout=0.0, kernel_size=3, dilation=1,
               order=2, share=False, use_update=True, device='tpu')

    B = 2
    C, N, T, P = cfg['c_in'], cfg['n_nodes'], cfg['inp_len'], cfg['pred_len']

    key = jax.random.PRNGKey(0)
    k_x, k_xm, k_ym, k_p = jax.random.split(key, 4)
    x = jax.random.normal(k_x, (B, C, N, T), dtype=jnp.float32)
    x_mark = jax.random.normal(k_xm, (B, cfg['c_date'], N, T), dtype=jnp.float32)  # unused
    y_mark = jax.random.normal(k_ym, (B, cfg['c_date'], N, P), dtype=jnp.float32)  # unused

    params = init_params(k_p, cfg)
    folded = fold_params(params, cfg)     # constant-fold weights once (eval mode)

    fwd = jax.jit(lambda xx, xm, ym: forward(folded, xx, xm, ym,
                                             emb_dim=cfg['emb_dim']))
    y, loss = fwd(x, x_mark, y_mark)
    jax.block_until_ready(y)
    jax.block_until_ready(loss)
    assert y.shape == (B, C, N, P), y.shape
    assert bool(jnp.all(jnp.isfinite(y)))
    print("KERNEL_OK")
</pallas_src>

<mosaic_0001>
module attributes {stable_mosaic.version = 11 : i64} {
  func.func @kernel(%arg0: memref<16x64xf32, #tpu.memory_space<vmem>>, %arg1: memref<64x64xbf16, #tpu.memory_space<vmem>>, %arg2: memref<1x64x64xbf16, #tpu.memory_space<vmem>>, %arg3: memref<1x64x64xbf16, #tpu.memory_space<vmem>>, %arg4: memref<1x4x4xf32, #tpu.memory_space<vmem>>, %arg5: memref<64x64xbf16, #tpu.memory_space<vmem>>, %arg6: memref<64x32xbf16, #tpu.memory_space<vmem>>, %arg7: memref<1x32xf32, #tpu.memory_space<vmem>>, %arg8: memref<1x32x32xbf16, #tpu.memory_space<vmem>>, %arg9: memref<1x32x32xbf16, #tpu.memory_space<vmem>>, %arg10: memref<1x4x4xf32, #tpu.memory_space<vmem>>, %arg11: memref<32x32xbf16, #tpu.memory_space<vmem>>, %arg12: memref<16x32xf32, #tpu.memory_space<vmem>>) attributes {dimension_semantics = [], scalar_prefetch = 0 : i64, scratch_operands = 0 : i64, tpu.core_type = #tpu.core_type<tc>} {
    %c0 = arith.constant 0 : index
    %c0_0 = arith.constant 0 : index
    %0 = vector.load %arg0[%c0, %c0_0] : memref<16x64xf32, #tpu.memory_space<vmem>>, vector<16x64xf32>
    %c0_1 = arith.constant 0 : index
    %c0_2 = arith.constant 0 : index
    %1 = vector.load %arg1[%c0_1, %c0_2] : memref<64x64xbf16, #tpu.memory_space<vmem>>, vector<64x64xbf16>
    %2 = arith.truncf %0 : vector<16x64xf32> to vector<16x64xbf16>
    %cst = arith.constant dense<0.000000e+00> : vector<16x64xf32>
    %3 = tpu.matmul %2, %1, %cst {dimension_numbers = #tpu.dot_dimension_numbers<[1], [0], [0], [1], [0, 0, 1, 1], [], []>} : vector<16x64xbf16>, vector<64x64xbf16>, vector<16x64xf32> -> vector<16x64xf32>
    %4 = tpu.iota {dimensions = array<i32: 0>} : vector<16x16xi32>
    %5 = tpu.iota {dimensions = array<i32: 1>} : vector<16x16xi32>
    %6 = arith.cmpi eq, %4, %5 : vector<16x16xi32>
    %7 = arith.extui %6 : vector<16x16xi1> to vector<16x16xi32>
    %8 = arith.sitofp %7 : vector<16x16xi32> to vector<16x16xf32>
    %c0_3 = arith.constant 0 : index
    %c0_4 = arith.constant 0 : index
    %c0_5 = arith.constant 0 : index
    %9 = vector.load %arg2[%c0_3, %c0_4, %c0_5] : memref<1x64x64xbf16, #tpu.memory_space<vmem>>, vector<1x64x64xbf16>
    %10 = vector.shape_cast %9 : vector<1x64x64xbf16> to vector<64x64xbf16>
    %11 = arith.truncf %3 : vector<16x64xf32> to vector<16x64xbf16>
    %cst_6 = arith.constant dense<0.000000e+00> : vector<16x64xf32>
    %12 = tpu.matmul %11, %10, %cst_6 {dimension_numbers = #tpu.dot_dimension_numbers<[1], [0], [0], [1], [0, 0, 1, 1], [], []>} : vector<16x64xbf16>, vector<64x64xbf16>, vector<16x64xf32> -> vector<16x64xf32>
    %c0_7 = arith.constant 0 : index
    %c0_8 = arith.constant 0 : index
    %c0_9 = arith.constant 0 : index
    %13 = vector.load %arg3[%c0_7, %c0_8, %c0_9] : memref<1x64x64xbf16, #tpu.memory_space<vmem>>, vector<1x64x64xbf16>
    %14 = vector.shape_cast %13 : vector<1x64x64xbf16> to vector<64x64xbf16>
    %15 = arith.truncf %3 : vector<16x64xf32> to vector<16x64xbf16>
    %cst_10 = arith.constant dense<0.000000e+00> : vector<16x64xf32>
    %16 = tpu.matmul %15, %14, %cst_10 {dimension_numbers = #tpu.dot_dimension_numbers<[1], [0], [0], [1], [0, 0, 1, 1], [], []>} : vector<16x64xbf16>, vector<64x64xbf16>, vector<16x64xf32> -> vector<16x64xf32>
    %cst_11 = arith.constant 0.000000e+00 : f32
    %17 = vector.broadcast %cst_11 : f32 to vector<16x64xf32>
    %18 = arith.subf %17, %16 : vector<16x64xf32>
    %19 = math.exp %18 : vector<16x64xf32>
    %cst_12 = arith.constant 1.000000e+00 : f32
    %20 = vector.broadcast %cst_12 : f32 to vector<16x64xf32>
    %21 = arith.addf %20, %19 : vector<16x64xf32>
    %cst_13 = arith.constant 1.000000e+00 : f32
    %22 = vector.broadcast %cst_13 : f32 to vector<16x64xf32>
    %23 = arith.divf %22, %21 : vector<16x64xf32>
    %24 = arith.mulf %12, %23 : vector<16x64xf32>
    %25 = arith.addf %3, %24 : vector<16x64xf32>
    %c0_14 = arith.constant 0 : index
    %c0_15 = arith.constant 0 : index
    %c0_16 = arith.constant 0 : index
    %26 = vector.load %arg4[%c0_14, %c0_15, %c0_16] : memref<1x4x4xf32, #tpu.memory_space<vmem>>, vector<1x4x4xf32>
    %27 = vector.shape_cast %26 : vector<1x4x4xf32> to vector<4x4xf32>
    %28 = vector.extract_strided_slice %25 {offsets = [0, 0], sizes = [8, 64], strides = [1, 1]} : vector<16x64xf32> to vector<8x64xf32>
    %cst_17 = arith.constant dense<0.000000e+00> : vector<64xf32>
    %29 = vector.multi_reduction <add>, %28, %cst_17 [0] : vector<8x64xf32> to vector<64xf32>
    %30 = vector.shape_cast %29 : vector<64xf32> to vector<1x64xf32>
    %cst_18 = arith.constant 8.000000e+00 : f32
    %31 = vector.broadcast %cst_18 : f32 to vector<1x64xf32>
    %32 = arith.divf %30, %31 : vector<1x64xf32>
    %33 = vector.extract_strided_slice %32 {offsets = [0, 0], sizes = [1, 16], strides = [1, 1]} : vector<1x64xf32> to vector<1x16xf32>
    %34 = vector.extract_strided_slice %32 {offsets = [0, 16], sizes = [1, 16], strides = [1, 1]} : vector<1x64xf32> to vector<1x16xf32>
    %35 = vector.extract_strided_slice %32 {offsets = [0, 32], sizes = [1, 16], strides = [1, 1]} : vector<1x64xf32> to vector<1x16xf32>
    %36 = vector.extract_strided_slice %32 {offsets = [0, 48], sizes = [1, 16], strides = [1, 1]} : vector<1x64xf32> to vector<1x16xf32>
    %37 = tpu.concatenate %33, %34, %35, %36 in 0 : vector<1x16xf32>, vector<1x16xf32>, vector<1x16xf32>, vector<1x16xf32> -> vector<4x16xf32>
    %cst_19 = arith.constant dense<0.000000e+00> : vector<4x16xf32>
    %38 = tpu.matmul %27, %37, %cst_19 {dimension_numbers = #tpu.dot_dimension_numbers<[1], [0], [0], [1], [0, 0, 1, 1], [], []>} : vector<4x4xf32>, vector<4x16xf32>, vector<4x16xf32> -> vector<4x16xf32>
    %39 = tpu.transpose %37, [1, 0] : vector<4x16xf32> -> vector<16x4xf32>
    %cst_20 = arith.constant dense<0.000000e+00> : vector<16x16xf32>
    %40 = tpu.matmul %39, %38, %cst_20 {dimension_numbers = #tpu.dot_dimension_numbers<[1], [0], [0], [1], [0, 0, 1, 1], [], []>} : vector<16x4xf32>, vector<4x16xf32>, vector<16x16xf32> -> vector<16x16xf32>
    %cst_21 = arith.constant 0.353553385 : f32
    %41 = vector.broadcast %cst_21 : f32 to vector<16x16xf32>
    %42 = arith.mulf %40, %41 : vector<16x16xf32>
    %cst_22 = arith.constant dense<0xFF800000> : vector<16xf32>
    %43 = vector.multi_reduction <maximumf>, %42, %cst_22 [1] : vector<16x16xf32> to vector<16xf32>
    %44 = vector.shape_cast %43 : vector<16xf32> to vector<16x1xf32>
    %45 = vector.broadcast %44 : vector<16x1xf32> to vector<16x16xf32>
    %46 = arith.subf %42, %45 : vector<16x16xf32>
    %47 = math.exp %46 : vector<16x16xf32>
    %cst_23 = arith.constant dense<0.000000e+00> : vector<16xf32>
    %48 = vector.multi_reduction <add>, %47, %cst_23 [1] : vector<16x16xf32> to vector<16xf32>
    %49 = vector.shape_cast %48 : vector<16xf32> to vector<16x1xf32>
    %50 = vector.broadcast %49 : vector<16x1xf32> to vector<16x16xf32>
    %51 = arith.divf %47, %50 : vector<16x16xf32>
    %52 = arith.mulf %51, %8 : vector<16x16xf32>
    %cst_24 = arith.constant dense<0.000000e+00> : vector<16xf32>
    %53 = vector.multi_reduction <add>, %52, %cst_24 [0] : vector<16x16xf32> to vector<16xf32>
    %54 = vector.shape_cast %53 : vector<16xf32> to vector<1x16xf32>
    %cst_25 = arith.constant 5.000000e-01 : f32
    %55 = vector.broadcast %cst_25 : f32 to vector<1x16xf32>
    %56 = arith.mulf %55, %54 : vector<1x16xf32>
    %cst_26 = arith.constant 4.471500e-02 : f32
    %57 = vector.broadcast %cst_26 : f32 to vector<1x16xf32>
    %58 = arith.mulf %57, %54 : vector<1x16xf32>
    %59 = arith.mulf %58, %54 : vector<1x16xf32>
    %60 = arith.mulf %59, %54 : vector<1x16xf32>
    %61 = arith.addf %54, %60 : vector<1x16xf32>
    %cst_27 = arith.constant 0.797884583 : f32
    %62 = vector.broadcast %cst_27 : f32 to vector<1x16xf32>
    %63 = arith.mulf %62, %61 : vector<1x16xf32>
    %64 = math.tanh %63 : vector<1x16xf32>
    %cst_28 = arith.constant 1.000000e+00 : f32
    %65 = vector.broadcast %cst_28 : f32 to vector<1x16xf32>
    %66 = arith.addf %65, %64 : vector<1x16xf32>
    %67 = arith.mulf %56, %66 : vector<1x16xf32>
    %cst_29 = arith.constant 1.000000e+00 : f32
    %68 = vector.broadcast %cst_29 : f32 to vector<1x16xf32>
    %69 = arith.addf %68, %67 : vector<1x16xf32>
    %70 = tpu.concatenate %69, %69, %69, %69 in 1 : vector<1x16xf32>, vector<1x16xf32>, vector<1x16xf32>, vector<1x16xf32> -> vector<1x64xf32>
    %71 = vector.shape_cast %70 : vector<1x64xf32> to vector<1x64xf32>
    %72 = vector.broadcast %71 : vector<1x64xf32> to vector<8x64xf32>
    %73 = vector.extract_strided_slice %25 {offsets = [8, 0], sizes = [8, 64], strides = [1, 1]} : vector<16x64xf32> to vector<8x64xf32>
    %cst_30 = arith.constant dense<0.000000e+00> : vector<64xf32>
    %74 = vector.multi_reduction <add>, %73, %cst_30 [0] : vector<8x64xf32> to vector<64xf32>
    %75 = vector.shape_cast %74 : vector<64xf32> to vector<1x64xf32>
    %cst_31 = arith.constant 8.000000e+00 : f32
    %76 = vector.broadcast %cst_31 : f32 to vector<1x64xf32>
    %77 = arith.divf %75, %76 : vector<1x64xf32>
    %78 = vector.extract_strided_slice %77 {offsets = [0, 0], sizes = [1, 16], strides = [1, 1]} : vector<1x64xf32> to vector<1x16xf32>
    %79 = vector.extract_strided_slice %77 {offsets = [0, 16], sizes = [1, 16], strides = [1, 1]} : vector<1x64xf32> to vector<1x16xf32>
    %80 = vector.extract_strided_slice %77 {offsets = [0, 32], sizes = [1, 16], strides = [1, 1]} : vector<1x64xf32> to vector<1x16xf32>
    %81 = vector.extract_strided_slice %77 {offsets = [0, 48], sizes = [1, 16], strides = [1, 1]} : vector<1x64xf32> to vector<1x16xf32>
    %82 = tpu.concatenate %78, %79, %80, %81 in 0 : vector<1x16xf32>, vector<1x16xf32>, vector<1x16xf32>, vector<1x16xf32> -> vector<4x16xf32>
    %cst_32 = arith.constant dense<0.000000e+00> : vector<4x16xf32>
    %83 = tpu.matmul %27, %82, %cst_32 {dimension_numbers = #tpu.dot_dimension_numbers<[1], [0], [0], [1], [0, 0, 1, 1], [], []>} : vector<4x4xf32>, vector<4x16xf32>, vector<4x16xf32> -> vector<4x16xf32>
    %84 = tpu.transpose %82, [1, 0] : vector<4x16xf32> -> vector<16x4xf32>
    %cst_33 = arith.constant dense<0.000000e+00> : vector<16x16xf32>
    %85 = tpu.matmul %84, %83, %cst_33 {dimension_numbers = #tpu.dot_dimension_numbers<[1], [0], [0], [1], [0, 0, 1, 1], [], []>} : vector<16x4xf32>, vector<4x16xf32>, vector<16x16xf32> -> vector<16x16xf32>
    %cst_34 = arith.constant 0.353553385 : f32
    %86 = vector.broadcast %cst_34 : f32 to vector<16x16xf32>
    %87 = arith.mulf %85, %86 : vector<16x16xf32>
    %cst_35 = arith.constant dense<0xFF800000> : vector<16xf32>
    %88 = vector.multi_reduction <maximumf>, %87, %cst_35 [1] : vector<16x16xf32> to vector<16xf32>
    %89 = vector.shape_cast %88 : vector<16xf32> to vector<16x1xf32>
    %90 = vector.broadcast %89 : vector<16x1xf32> to vector<16x16xf32>
    %91 = arith.subf %87, %90 : vector<16x16xf32>
    %92 = math.exp %91 : vector<16x16xf32>
    %cst_36 = arith.constant dense<0.000000e+00> : vector<16xf32>
    %93 = vector.multi_reduction <add>, %92, %cst_36 [1] : vector<16x16xf32> to vector<16xf32>
    %94 = vector.shape_cast %93 : vector<16xf32> to vector<16x1xf32>
    %95 = vector.broadcast %94 : vector<16x1xf32> to vector<16x16xf32>
    %96 = arith.divf %92, %95 : vector<16x16xf32>
    %97 = arith.mulf %96, %8 : vector<16x16xf32>
    %cst_37 = arith.constant dense<0.000000e+00> : vector<16xf32>
    %98 = vector.multi_reduction <add>, %97, %cst_37 [0] : vector<16x16xf32> to vector<16xf32>
    %99 = vector.shape_cast %98 : vector<16xf32> to vector<1x16xf32>
    %cst_38 = arith.constant 5.000000e-01 : f32
    %100 = vector.broadcast %cst_38 : f32 to vector<1x16xf32>
    %101 = arith.mulf %100, %99 : vector<1x16xf32>
    %cst_39 = arith.constant 4.471500e-02 : f32
    %102 = vector.broadcast %cst_39 : f32 to vector<1x16xf32>
    %103 = arith.mulf %102, %99 : vector<1x16xf32>
    %104 = arith.mulf %103, %99 : vector<1x16xf32>
    %105 = arith.mulf %104, %99 : vector<1x16xf32>
    %106 = arith.addf %99, %105 : vector<1x16xf32>
    %cst_40 = arith.constant 0.797884583 : f32
    %107 = vector.broadcast %cst_40 : f32 to vector<1x16xf32>
    %108 = arith.mulf %107, %106 : vector<1x16xf32>
    %109 = math.tanh %108 : vector<1x16xf32>
    %cst_41 = arith.constant 1.000000e+00 : f32
    %110 = vector.broadcast %cst_41 : f32 to vector<1x16xf32>
    %111 = arith.addf %110, %109 : vector<1x16xf32>
    %112 = arith.mulf %101, %111 : vector<1x16xf32>
    %cst_42 = arith.constant 1.000000e+00 : f32
    %113 = vector.broadcast %cst_42 : f32 to vector<1x16xf32>
    %114 = arith.addf %113, %112 : vector<1x16xf32>
    %115 = tpu.concatenate %114, %114, %114, %114 in 1 : vector<1x16xf32>, vector<1x16xf32>, vector<1x16xf32>, vector<1x16xf32> -> vector<1x64xf32>
    %116 = vector.shape_cast %115 : vector<1x64xf32> to vector<1x64xf32>
    %117 = vector.broadcast %116 : vector<1x64xf32> to vector<8x64xf32>
    %118 = tpu.concatenate %72, %117 in 0 : vector<8x64xf32>, vector<8x64xf32> -> vector<16x64xf32>
    %119 = arith.mulf %25, %118 : vector<16x64xf32>
    %c0_43 = arith.constant 0 : index
    %c0_44 = arith.constant 0 : index
    %120 = vector.load %arg5[%c0_43, %c0_44] : memref<64x64xbf16, #tpu.memory_space<vmem>>, vector<64x64xbf16>
    %121 = arith.truncf %119 : vector<16x64xf32> to vector<16x64xbf16>
    %cst_45 = arith.constant dense<0.000000e+00> : vector<16x64xf32>
    %122 = tpu.matmul %121, %120, %cst_45 {dimension_numbers = #tpu.dot_dimension_numbers<[1], [0], [0], [1], [0, 0, 1, 1], [], []>} : vector<16x64xbf16>, vector<64x64xbf16>, vector<16x64xf32> -> vector<16x64xf32>
    %123 = arith.addf %0, %122 : vector<16x64xf32>
    %c0_46 = arith.constant 0 : index
    %c0_47 = arith.constant 0 : index
    %124 = vector.load %arg6[%c0_46, %c0_47] : memref<64x32xbf16, #tpu.memory_space<vmem>>, vector<64x32xbf16>
    %125 = arith.truncf %123 : vector<16x64xf32> to vector<16x64xbf16>
    %cst_48 = arith.constant dense<0.000000e+00> : vector<16x32xf32>
    %126 = tpu.matmul %125, %124, %cst_48 {dimension_numbers = #tpu.dot_dimension_numbers<[1], [0], [0], [1], [0, 0, 1, 1], [], []>} : vector<16x64xbf16>, vector<64x32xbf16>, vector<16x32xf32> -> vector<16x32xf32>
    %c0_49 = arith.constant 0 : index
    %c0_50 = arith.constant 0 : index
    %127 = vector.load %arg7[%c0_49, %c0_50] : memref<1x32xf32, #tpu.memory_space<vmem>>, vector<1x32xf32>
    %128 = vector.broadcast %127 : vector<1x32xf32> to vector<16x32xf32>
    %129 = arith.addf %126, %128 : vector<16x32xf32>
    %130 = tpu.iota {dimensions = array<i32: 0>} : vector<8x8xi32>
    %131 = tpu.iota {dimensions = array<i32: 1>} : vector<8x8xi32>
    %132 = arith.cmpi eq, %130, %131 : vector<8x8xi32>
    %133 = arith.extui %132 : vector<8x8xi1> to vector<8x8xi32>
    %134 = arith.sitofp %133 : vector<8x8xi32> to vector<8x8xf32>
    %c0_51 = arith.constant 0 : index
    %c0_52 = arith.constant 0 : index
    %c0_53 = arith.constant 0 : index
    %135 = vector.load %arg8[%c0_51, %c0_52, %c0_53] : memref<1x32x32xbf16, #tpu.memory_space<vmem>>, vector<1x32x32xbf16>
    %136 = vector.shape_cast %135 : vector<1x32x32xbf16> to vector<32x32xbf16>
    %137 = arith.truncf %129 : vector<16x32xf32> to vector<16x32xbf16>
    %cst_54 = arith.constant dense<0.000000e+00> : vector<16x32xf32>
    %138 = tpu.matmul %137, %136, %cst_54 {dimension_numbers = #tpu.dot_dimension_numbers<[1], [0], [0], [1], [0, 0, 1, 1], [], []>} : vector<16x32xbf16>, vector<32x32xbf16>, vector<16x32xf32> -> vector<16x32xf32>
    %c0_55 = arith.constant 0 : index
    %c0_56 = arith.constant 0 : index
    %c0_57 = arith.constant 0 : index
    %139 = vector.load %arg9[%c0_55, %c0_56, %c0_57] : memref<1x32x32xbf16, #tpu.memory_space<vmem>>, vector<1x32x32xbf16>
    %140 = vector.shape_cast %139 : vector<1x32x32xbf16> to vector<32x32xbf16>
    %141 = arith.truncf %129 : vector<16x32xf32> to vector<16x32xbf16>
    %cst_58 = arith.constant dense<0.000000e+00> : vector<16x32xf32>
    %142 = tpu.matmul %141, %140, %cst_58 {dimension_numbers = #tpu.dot_dimension_numbers<[1], [0], [0], [1], [0, 0, 1, 1], [], []>} : vector<16x32xbf16>, vector<32x32xbf16>, vector<16x32xf32> -> vector<16x32xf32>
    %cst_59 = arith.constant 0.000000e+00 : f32
    %143 = vector.broadcast %cst_59 : f32 to vector<16x32xf32>
    %144 = arith.subf %143, %142 : vector<16x32xf32>
    %145 = math.exp %144 : vector<16x32xf32>
    %cst_60 = arith.constant 1.000000e+00 : f32
    %146 = vector.broadcast %cst_60 : f32 to vector<16x32xf32>
    %147 = arith.addf %146, %145 : vector<16x32xf32>
    %cst_61 = arith.constant 1.000000e+00 : f32
    %148 = vector.broadcast %cst_61 : f32 to vector<16x32xf32>
    %149 = arith.divf %148, %147 : vector<16x32xf32>
    %150 = arith.mulf %138, %149 : vector<16x32xf32>
    %151 = arith.addf %129, %150 : vector<16x32xf32>
    %c0_62 = arith.constant 0 : index
    %c0_63 = arith.constant 0 : index
    %c0_64 = arith.constant 0 : index
    %152 = vector.load %arg10[%c0_62, %c0_63, %c0_64] : memref<1x4x4xf32, #tpu.memory_space<vmem>>, vector<1x4x4xf32>
    %153 = vector.shape_cast %152 : vector<1x4x4xf32> to vector<4x4xf32>
    %154 = vector.extract_strided_slice %151 {offsets = [0, 0], sizes = [8, 32], strides = [1, 1]} : vector<16x32xf32> to vector<8x32xf32>
    %cst_65 = arith.constant dense<0.000000e+00> : vector<32xf32>
    %155 = vector.multi_reduction <add>, %154, %cst_65 [0] : vector<8x32xf32> to vector<32xf32>
    %156 = vector.shape_cast %155 : vector<32xf32> to vector<1x32xf32>
    %cst_66 = arith.constant 8.000000e+00 : f32
    %157 = vector.broadcast %cst_66 : f32 to vector<1x32xf32>
    %158 = arith.divf %156, %157 : vector<1x32xf32>
    %159 = vector.extract_strided_slice %158 {offsets = [0, 0], sizes = [1, 8], strides = [1, 1]} : vector<1x32xf32> to vector<1x8xf32>
    %160 = vector.extract_strided_slice %158 {offsets = [0, 8], sizes = [1, 8], strides = [1, 1]} : vector<1x32xf32> to vector<1x8xf32>
    %161 = vector.extract_strided_slice %158 {offsets = [0, 16], sizes = [1, 8], strides = [1, 1]} : vector<1x32xf32> to vector<1x8xf32>
    %162 = vector.extract_strided_slice %158 {offsets = [0, 24], sizes = [1, 8], strides = [1, 1]} : vector<1x32xf32> to vector<1x8xf32>
    %163 = tpu.concatenate %159, %160, %161, %162 in 0 : vector<1x8xf32>, vector<1x8xf32>, vector<1x8xf32>, vector<1x8xf32> -> vector<4x8xf32>
    %cst_67 = arith.constant dense<0.000000e+00> : vector<4x8xf32>
    %164 = tpu.matmul %153, %163, %cst_67 {dimension_numbers = #tpu.dot_dimension_numbers<[1], [0], [0], [1], [0, 0, 1, 1], [], []>} : vector<4x4xf32>, vector<4x8xf32>, vector<4x8xf32> -> vector<4x8xf32>
    %165 = tpu.transpose %163, [1, 0] : vector<4x8xf32> -> vector<8x4xf32>
    %cst_68 = arith.constant dense<0.000000e+00> : vector<8x8xf32>
    %166 = tpu.matmul %165, %164, %cst_68 {dimension_numbers = #tpu.dot_dimension_numbers<[1], [0], [0], [1], [0, 0, 1, 1], [], []>} : vector<8x4xf32>, vector<4x8xf32>, vector<8x8xf32> -> vector<8x8xf32>
    %cst_69 = arith.constant 0.353553385 : f32
    %167 = vector.broadcast %cst_69 : f32 to vector<8x8xf32>
    %168 = arith.mulf %166, %167 : vector<8x8xf32>
    %cst_70 = arith.constant dense<0xFF800000> : vector<8xf32>
    %169 = vector.multi_reduction <maximumf>, %168, %cst_70 [1] : vector<8x8xf32> to vector<8xf32>
    %170 = vector.shape_cast %169 : vector<8xf32> to vector<8x1xf32>
    %171 = vector.broadcast %170 : vector<8x1xf32> to vector<8x8xf32>
    %172 = arith.subf %168, %171 : vector<8x8xf32>
    %173 = math.exp %172 : vector<8x8xf32>
    %cst_71 = arith.constant dense<0.000000e+00> : vector<8xf32>
    %174 = vector.multi_reduction <add>, %173, %cst_71 [1] : vector<8x8xf32> to vector<8xf32>
    %175 = vector.shape_cast %174 : vector<8xf32> to vector<8x1xf32>
    %176 = vector.broadcast %175 : vector<8x1xf32> to vector<8x8xf32>
    %177 = arith.divf %173, %176 : vector<8x8xf32>
    %178 = arith.mulf %177, %134 : vector<8x8xf32>
    %cst_72 = arith.constant dense<0.000000e+00> : vector<8xf32>
    %179 = vector.multi_reduction <add>, %178, %cst_72 [0] : vector<8x8xf32> to vector<8xf32>
    %180 = vector.shape_cast %179 : vector<8xf32> to vector<1x8xf32>
    %cst_73 = arith.constant 5.000000e-01 : f32
    %181 = vector.broadcast %cst_73 : f32 to vector<1x8xf32>
    %182 = arith.mulf %181, %180 : vector<1x8xf32>
    %cst_74 = arith.constant 4.471500e-02 : f32
    %183 = vector.broadcast %cst_74 : f32 to vector<1x8xf32>
    %184 = arith.mulf %183, %180 : vector<1x8xf32>
    %185 = arith.mulf %184, %180 : vector<1x8xf32>
    %186 = arith.mulf %185, %180 : vector<1x8xf32>
    %187 = arith.addf %180, %186 : vector<1x8xf32>
    %cst_75 = arith.constant 0.797884583 : f32
    %188 = vector.broadcast %cst_75 : f32 to vector<1x8xf32>
    %189 = arith.mulf %188, %187 : vector<1x8xf32>
    %190 = math.tanh %189 : vector<1x8xf32>
    %cst_76 = arith.constant 1.000000e+00 : f32
    %191 = vector.broadcast %cst_76 : f32 to vector<1x8xf32>
    %192 = arith.addf %191, %190 : vector<1x8xf32>
    %193 = arith.mulf %182, %192 : vector<1x8xf32>
    %cst_77 = arith.constant 1.000000e+00 : f32
    %194 = vector.broadcast %cst_77 : f32 to vector<1x8xf32>
    %195 = arith.addf %194, %193 : vector<1x8xf32>
    %196 = tpu.concatenate %195, %195, %195, %195 in 1 : vector<1x8xf32>, vector<1x8xf32>, vector<1x8xf32>, vector<1x8xf32> -> vector<1x32xf32>
    %197 = vector.shape_cast %196 : vector<1x32xf32> to vector<1x32xf32>
    %198 = vector.broadcast %197 : vector<1x32xf32> to vector<8x32xf32>
    %199 = vector.extract_strided_slice %151 {offsets = [8, 0], sizes = [8, 32], strides = [1, 1]} : vector<16x32xf32> to vector<8x32xf32>
    %cst_78 = arith.constant dense<0.000000e+00> : vector<32xf32>
    %200 = vector.multi_reduction <add>, %199, %cst_78 [0] : vector<8x32xf32> to vector<32xf32>
    %201 = vector.shape_cast %200 : vector<32xf32> to vector<1x32xf32>
    %cst_79 = arith.constant 8.000000e+00 : f32
    %202 = vector.broadcast %cst_79 : f32 to vector<1x32xf32>
    %203 = arith.divf %201, %202 : vector<1x32xf32>
    %204 = vector.extract_strided_slice %203 {offsets = [0, 0], sizes = [1, 8], strides = [1, 1]} : vector<1x32xf32> to vector<1x8xf32>
    %205 = vector.extract_strided_slice %203 {offsets = [0, 8], sizes = [1, 8], strides = [1, 1]} : vector<1x32xf32> to vector<1x8xf32>
    %206 = vector.extract_strided_slice %203 {offsets = [0, 16], sizes = [1, 8], strides = [1, 1]} : vector<1x32xf32> to vector<1x8xf32>
    %207 = vector.extract_strided_slice %203 {offsets = [0, 24], sizes = [1, 8], strides = [1, 1]} : vector<1x32xf32> to vector<1x8xf32>
    %208 = tpu.concatenate %204, %205, %206, %207 in 0 : vector<1x8xf32>, vector<1x8xf32>, vector<1x8xf32>, vector<1x8xf32> -> vector<4x8xf32>
    %cst_80 = arith.constant dense<0.000000e+00> : vector<4x8xf32>
    %209 = tpu.matmul %153, %208, %cst_80 {dimension_numbers = #tpu.dot_dimension_numbers<[1], [0], [0], [1], [0, 0, 1, 1], [], []>} : vector<4x4xf32>, vector<4x8xf32>, vector<4x8xf32> -> vector<4x8xf32>
    %210 = tpu.transpose %208, [1, 0] : vector<4x8xf32> -> vector<8x4xf32>
    %cst_81 = arith.constant dense<0.000000e+00> : vector<8x8xf32>
    %211 = tpu.matmul %210, %209, %cst_81 {dimension_numbers = #tpu.dot_dimension_numbers<[1], [0], [0], [1], [0, 0, 1, 1], [], []>} : vector<8x4xf32>, vector<4x8xf32>, vector<8x8xf32> -> vector<8x8xf32>
    %cst_82 = arith.constant 0.353553385 : f32
    %212 = vector.broadcast %cst_82 : f32 to vector<8x8xf32>
    %213 = arith.mulf %211, %212 : vector<8x8xf32>
    %cst_83 = arith.constant dense<0xFF800000> : vector<8xf32>
    %214 = vector.multi_reduction <maximumf>, %213, %cst_83 [1] : vector<8x8xf32> to vector<8xf32>
    %215 = vector.shape_cast %214 : vector<8xf32> to vector<8x1xf32>
    %216 = vector.broadcast %215 : vector<8x1xf32> to vector<8x8xf32>
    %217 = arith.subf %213, %216 : vector<8x8xf32>
    %218 = math.exp %217 : vector<8x8xf32>
    %cst_84 = arith.constant dense<0.000000e+00> : vector<8xf32>
    %219 = vector.multi_reduction <add>, %218, %cst_84 [1] : vector<8x8xf32> to vector<8xf32>
    %220 = vector.shape_cast %219 : vector<8xf32> to vector<8x1xf32>
    %221 = vector.broadcast %220 : vector<8x1xf32> to vector<8x8xf32>
    %222 = arith.divf %218, %221 : vector<8x8xf32>
    %223 = arith.mulf %222, %134 : vector<8x8xf32>
    %cst_85 = arith.constant dense<0.000000e+00> : vector<8xf32>
    %224 = vector.multi_reduction <add>, %223, %cst_85 [0] : vector<8x8xf32> to vector<8xf32>
    %225 = vector.shape_cast %224 : vector<8xf32> to vector<1x8xf32>
    %cst_86 = arith.constant 5.000000e-01 : f32
    %226 = vector.broadcast %cst_86 : f32 to vector<1x8xf32>
    %227 = arith.mulf %226, %225 : vector<1x8xf32>
    %cst_87 = arith.constant 4.471500e-02 : f32
    %228 = vector.broadcast %cst_87 : f32 to vector<1x8xf32>
    %229 = arith.mulf %228, %225 : vector<1x8xf32>
    %230 = arith.mulf %229, %225 : vector<1x8xf32>
    %231 = arith.mulf %230, %225 : vector<1x8xf32>
    %232 = arith.addf %225, %231 : vector<1x8xf32>
    %cst_88 = arith.constant 0.797884583 : f32
    %233 = vector.broadcast %cst_88 : f32 to vector<1x8xf32>
    %234 = arith.mulf %233, %232 : vector<1x8xf32>
    %235 = math.tanh %234 : vector<1x8xf32>
    %cst_89 = arith.constant 1.000000e+00 : f32
    %236 = vector.broadcast %cst_89 : f32 to vector<1x8xf32>
    %237 = arith.addf %236, %235 : vector<1x8xf32>
    %238 = arith.mulf %227, %237 : vector<1x8xf32>
    %cst_90 = arith.constant 1.000000e+00 : f32
    %239 = vector.broadcast %cst_90 : f32 to vector<1x8xf32>
    %240 = arith.addf %239, %238 : vector<1x8xf32>
    %241 = tpu.concatenate %240, %240, %240, %240 in 1 : vector<1x8xf32>, vector<1x8xf32>, vector<1x8xf32>, vector<1x8xf32> -> vector<1x32xf32>
    %242 = vector.shape_cast %241 : vector<1x32xf32> to vector<1x32xf32>
    %243 = vector.broadcast %242 : vector<1x32xf32> to vector<8x32xf32>
    %244 = tpu.concatenate %198, %243 in 0 : vector<8x32xf32>, vector<8x32xf32> -> vector<16x32xf32>
    %245 = arith.mulf %151, %244 : vector<16x32xf32>
    %c0_91 = arith.constant 0 : index
    %c0_92 = arith.constant 0 : index
    %246 = vector.load %arg11[%c0_91, %c0_92] : memref<32x32xbf16, #tpu.memory_space<vmem>>, vector<32x32xbf16>
    %247 = arith.truncf %245 : vector<16x32xf32> to vector<16x32xbf16>
    %cst_93 = arith.constant dense<0.000000e+00> : vector<16x32xf32>
    %248 = tpu.matmul %247, %246, %cst_93 {dimension_numbers = #tpu.dot_dimension_numbers<[1], [0], [0], [1], [0, 0, 1, 1], [], []>} : vector<16x32xbf16>, vector<32x32xbf16>, vector<16x32xf32> -> vector<16x32xf32>
    %249 = arith.addf %129, %248 : vector<16x32xf32>
    %c0_94 = arith.constant 0 : index
    %c0_95 = arith.constant 0 : index
    %250 = vector.load %arg12[%c0_94, %c0_95] : memref<16x32xf32, #tpu.memory_space<vmem>>, vector<16x32xf32>
    tpu.vector_store %arg12[%c0_94, %c0_95], %249 {strides = array<i32>} : memref<16x32xf32, #tpu.memory_space<vmem>>, vector<16x32xf32>,
    return
  }
}

</mosaic_0001>

<bundles_post_ra>
// kernel: _lambda_.1
= control target key start
LH: loop header
LB: loop body
LE: loop exit
PB: predicated region body
PF: predicated region fallthrough
CT: control target
= control target key end

     0   :  { %17 = vsyncpa [#allocation3], 0  ;;  %s2083_s21 = smov [#allocation2]   ;;  %s2463_s0 = inlined_call_operand.vmem [shape: f32[16,64], index: 0, kind: input, shape index: {}]   ;;  %s2464_s1 = inlined_call_operand.vmem [shape: bf16[64,64], index: 1, kind: input, shape index: {}]   ;;  %s2465_s2 = inlined_call_operand.vmem [shape: bf16[1,64,64], index: 2, kind: input, shape index: {}]   ;;  %s2466_s3 = inlined_call_operand.vmem [shape: bf16[1,64,64], index: 3, kind: input, shape index: {}]   ;;  %s2467_s4 = inlined_call_operand.vmem [shape: f32[1,4,4], index: 4, kind: input, shape index: {}]   ;;  %s2468_s5 = inlined_call_operand.vmem [shape: bf16[64,64], index: 5, kind: input, shape index: {}]   ;;  %s2469_s6 = inlined_call_operand.vmem [shape: bf16[64,32], index: 6, kind: input, shape index: {}]   ;;  %s2470_s7 = inlined_call_operand.vmem [shape: f32[1,32], index: 7, kind: input, shape index: {}]   ;;  %s2471_s8 = inlined_call_operand.vmem [shape: bf16[1,32,32], index: 8, kind: input, shape index: {}]   ;;  %s2472_s9 = inlined_call_operand.vmem [shape: bf16[1,32,32], index: 9, kind: input, shape index: {}]   ;;  %s2473_s10 = inlined_call_operand.hbm [shape: f32[1,4,4], index: 10, kind: input, shape index: {}]   ;;  %s2474_s11 = inlined_call_operand.vmem [shape: bf16[32,32], index: 11, kind: input, shape index: {}]   ;;  %s2475_s12 = inlined_call_operand.vmem [shape: f32[16,32], index: 12, kind: output, shape index: {}]  }
   0x1   :  { %s44_s22 = sshll.u32 %s2083_s21, 4  ;;  %s45_s22 = int_to_ptr.vmem [resolvable:$true] %s44_s22 }
   0x2   :  { %s2069_s23 = scalar_lea.vmem %s45_s22, 64  ;;  %p2074_p1 = scmp.lt.s32.totalorder %s45_s22, %s45_s22 }
   0x3   :  { %p2070_p0 = scmp.ne.s32.totalorder %s45_s22, %s2069_s23  ;;  %p2075_p2 = scmp.lt.s32.totalorder %s2069_s23, %s2069_s23 }
   0x5   :  { %p2076_p3 = por %p2075_p2, %p2074_p1 }
   0x7   :  { %p2077_p4 = pnand %p2076_p3, %p2070_p0 }
   0x9   :  { %2080 = shalt.err (!%p2077_p4)
}
   0xa   :  { %47 = dma.hbm_to_vmem [thread:$0]  %s2473_s10, 64, %s45_s22, [#allocation3]  }
   0xb   :  { %2081 = dma.done.wait [#allocation3], 64  }
   0xc   :  { %2082 = vsyncadd [#allocation3], 4294967232  ;;  %v2084_v0 = vmov 0.0   ;;  %vm2085_vm0 = vmmov 0   ;;  %v1987_v1 = vld [vmem:[%s2464_s1 + $0x18] sm:$0xff]   ;;  %v1988_v2 = vld [vmem:[%s2464_s1 + $0x10] sm:$0xff]  }
   0xd   :  { %1850 = vmatprep.subr.bf16.mxu0 %v2084_v0  ;;  %1858 = vmatprep.mubr.msk.bf16.mxu0 %vm2085_vm0, %v2084_v0  ;;  %v1991_v3 = vld [vmem:[%s2465_s2 + $0x18] sm:$0xff]   ;;  %v1989_v4 = vld [vmem:[%s2464_s1 + $0x8] sm:$0xff]   ;;  %v1993_v5 = vld [vmem:[%s2465_s2 + $0x10] sm:$0xff]   ;;  %vm89_vm1 = vcmask 523264   ;;  %s2088_s14 = smov 96   ;;  %vm331_vm2 = vcmask 1040384  }
   0xe   :  { %1862 = vmatprep.subr.bf16.mxu1 %v2084_v0  ;;  %1870 = vmatprep.mubr.msk.bf16.mxu1 %vm2085_vm0, %v2084_v0  ;;  %v1990_v6 = vld [vmem:[%s2464_s1] sm:$0xff]   ;;  %v2198_v8 = vld [vmem:[%s2463_s0 + $0x8] sm:$0xff]  ;;  %v1992_v9 = vld [vmem:[%s2466_s3 + $0x18] sm:$0xff]   ;;  %vm333_vm3 = vcmask 1041408   ;;  %vm335_vm4 = vcmask 1042432   ;;  %vm341_vm5 = vcmask 1043456  }
   0xf   :  { %1851 = vmatpush3.bf16.msra.mxu0 %v1987_v1  ;;  %1863 = vmatpush3.bf16.msra.mxu1 %v1991_v3  ;;  %v2193_v7 = vld [vmem:[%s2463_s0] sm:$0xff]  ;;  %v1994_v11 = vld [vmem:[%s2466_s3 + $0x10] sm:$0xff]   ;;  %v1995_v12 = vld [vmem:[%s2465_s2 + $0x8] sm:$0xff]   ;;  %vm337_vm6 = vcmask 31744   ;;  %vm533_vm7 = vcmask 130048   ;;  %s2090_s17 = smov 32  }
  0x10   :  { %1852 = vmatprep.subr.bf16.mxu0 %v2084_v0  ;;  %1864 = vmatprep.subr.bf16.mxu1 %v2084_v0  ;;  %v64_v10 = vpack.c.bf16 %v2198_v8, %v2193_v7  ;;  %v1996_v13 = vld [vmem:[%s2466_s3 + $0x8] sm:$0xff]   ;;  %v1997_v14 = vld [vmem:[%s2465_s2] sm:$0xff]   ;;  %s2086_s2 = smov 80   ;;  %vm588_vm10 = vcmask 261120   ;;  %vm590_vm11 = vcmask 392192   ;;  %vm1374_vm12 = vcmask 64512  }
  0x11   :  { %v1998_v15 = vld [vmem:[%s2466_s3] sm:$0xff]   ;;  %s2087_s3 = smov 112   ;;  %s2095_s24 = smov 24   ;;  %vm1416_vm13 = vcmask 195584  }
  0x13   :  { %1853 = vmatpush3.bf16.msra.mxu0 %v1988_v2  ;;  %1865 = vmatpush3.bf16.msra.mxu1 %v1993_v5  ;;  %v311_v2 = vld [vmem:[%s2467_s4] sm:$0xf]  ;;  %s2089_s4 = smov 16  }
  0x14   :  { %1854 = vmatprep.subr.bf16.mxu0 %v2084_v0  ;;  %1866 = vmatprep.subr.bf16.mxu1 %v2084_v0 }
  0x17   :  { %1855 = vmatpush3.bf16.msra.mxu0 %v1989_v4  ;;  %1867 = vmatpush3.bf16.msra.mxu1 %v1995_v12 }
  0x18   :  { %1856 = vmatprep.subr.bf16.mxu0 %v2084_v0  ;;  %1868 = vmatprep.subr.bf16.mxu1 %v2084_v0 }
  0x1b   :  { %1857 = vmatpush3.bf16.msra.mxu0 %v1990_v6  ;;  %1869 = vmatpush3.bf16.msra.mxu1 %v1997_v14 }
  0x1c   :  { %1874 = vmatprep.subr.bf16.mxu0 %v2084_v0  ;;  %1886 = vmatprep.subr.mxu1 %v2084_v0 }
  0x1e   :  { %1859 = vmatmul.mubr.msk.bf16.vlgmr.msra.gmra.mxu0 %vm89_vm1, %v64_v10 }
  0x1f   :  { %1875 = vmatpush3.bf16.msra.mxu0 %v1992_v9  ;;  %1882 = vmatprep.mubr.msk.bf16.mxu0 %vm2085_vm0, %v2084_v0 }
  0x20   :  { %1876 = vmatprep.subr.bf16.mxu0 %v2084_v0 }
  0x23   :  { %1877 = vmatpush3.bf16.msra.mxu0 %v1994_v11 }
  0x24   :  { %1878 = vmatprep.subr.bf16.mxu0 %v2084_v0 }
  0x27   :  { %1879 = vmatpush3.bf16.msra.mxu0 %v1996_v13 }
  0x28   :  { %1880 = vmatprep.subr.bf16.mxu0 %v2084_v0 }
  0x2b   :  { %1881 = vmatpush3.bf16.msra.mxu0 %v1998_v15 }
  0x2c   :  { %1906 = vmatprep.subr.bf16.mxu0 %v2084_v0 }
  0xde   :  { %v127_v16 = vpop.f32.mrf.mxu0 }
  0xe0   :  { %v1860_v17 = vpop.f32.mrf.mxu0 }
  0xe2   :  { %v130_v18 = vpop.f32.mrf.mxu0 }
  0xe3   :  { %v153_v19 = vpack.c.bf16 %v130_v18, %v127_v16 }
  0xe4   :  { %v1861_v20 = vpop.f32.mrf.mxu0 }
  0xe5   :  { %1871 = vmatmul.mubr.msk.bf16.vlgmr.msra.gmra.mxu1 %vm89_vm1, %v153_v19  ;;  %1883 = vmatmul.mubr.msk.bf16.vlgmr.msra.gmra.mxu0 %vm89_vm1, %v153_v19 }
  0xe6   :  { %1888 = vmatprep.mubr.msk.f32.mxu1 %vm2085_vm0, %v2084_v0  ;;  %1914 = vmatprep.mubr.msk.bf16.mxu0 %vm2085_vm0, %v2084_v0 }
 0x1a5   :  { %v215_v21 = vpop.f32.mrf.mxu1  ;;  %v288_v22 = vpop.f32.mrf.mxu0 }
 0x1a6   :  { %v295_v23 = vsub.f32 0.0, %v288_v22 }
 0x1a7   :  { %v1872_v24 = vpop.f32.mrf.mxu1  ;;  %v1884_v25 = vpop.f32.mrf.mxu0 }
 0x1a8   :  { %v297_v26 = vmul.f32 1.442695, %v295_v23 }
 0x1a9   :  { %v218_v27 = vpop.f32.mrf.mxu1  ;;  %v291_v28 = vpop.f32.mrf.mxu0 }
 0x1aa   :  { %2013 = vpow2.f32 %v297_v26  ;;  %v296_v29 = vsub.f32 0.0, %v291_v28 }
 0x1ab   :  { %v1873_v30 = vpop.f32.mrf.mxu1  ;;  %v1885_v31 = vpop.f32.mrf.mxu0 }
 0x1ac   :  { %v299_v32 = vmul.f32 1.442695, %v296_v29 }
 0x1ae   :  { %2015 = vpow2.f32 %v299_v32 }
 0x1b7   :  { %v2014_v33 = vpop.eup %2013 }
 0x1b8   :  { %v301_v34 = vadd.f32 1.0, %v2014_v33 }
 0x1ba   :  { %2017 = vrcp.f32 %v301_v34 }
 0x1bb   :  { %v2016_v35 = vpop.eup %2015 }
 0x1bc   :  { %v302_v36 = vadd.f32 1.0, %v2016_v35 }
 0x1be   :  { %2019 = vrcp.f32 %v302_v36 }
 0x1c7   :  { %v2018_v37 = vpop.eup %2017 }
 0x1c8   :  { %v307_v38 = vmul.f32 %v2018_v37, %v215_v21 }
 0x1ca   :  { %v2239_v39 = vadd.f32 %v307_v38, %v127_v16 }
 0x1cb   :  { %v2020_v40 = vpop.eup %2019 }
 0x1cc   :  { %v312_v41 = vsel %vm89_vm1, %v2239_v39, 0.0  ;;  %v308_v42 = vmul.f32 %v2020_v40, %v218_v27 }
 0x1cd   :  { %v313_v43 = vrot.slane %v312_v41, 4 }
 0x1ce   :  { %v2243_v44 = vadd.f32 %v308_v42, %v130_v18 }
 0x1cf   :  { %v314_v45 = vadd.f32 %v313_v43, %v312_v41 }
 0x1d0   :  { %v596_v46 = vsel %vm89_vm1, %v2243_v44, 0.0 }
 0x1d1   :  { %v315_v47 = vrot.slane %v314_v45, 2  ;;  %v597_v48 = vrot.slane %v596_v46, 4 }
 0x1d3   :  { %v316_v49 = vadd.f32 %v315_v47, %v314_v45  ;;  %v598_v50 = vadd.f32 %v597_v48, %v596_v46 }
 0x1d5   :  { %v317_v51 = vrot.slane %v316_v49, 1  ;;  %v599_v52 = vrot.slane %v598_v50, 2 }
 0x1d7   :  { %v318_v53 = vadd.f32 %v317_v51, %v316_v49  ;;  %v600_v54 = vadd.f32 %v599_v52, %v598_v50  ;;  %v134_v51 = vlaneseq }
 0x1d9   :  { %v320_v55 = vmul.f32 0.125, %v318_v53  ;;  %v601_v56 = vrot.slane %v600_v54, 1  ;;  %v2282_v52 = vshrl.u32 %v134_v51, 7  ;;  %v138_v53 = vand.u32 127, %v134_v51  ;;  %v2001_v51 = vld [vmem:[%s2468_s5 + $0x8] sm:$0xff]  }
 0x1db   :  { %328 = vrot.lane.b32.xlu1 %v320_v55, %s2086_s2  ;;  %322 = vrot.lane.b32.xlu0 %v320_v55, %s2087_s3  ;;  %v602_v57 = vadd.f32 %v601_v56, %v600_v54  ;;  %v136_v54 = vadd.s32 8, %v2282_v52  ;;  %vm139_vm8 = vcmp.eq.s32.totalorder %v2282_v52, %v138_v53 }
 0x1dd   :  { %v603_v58 = vmul.f32 0.125, %v602_v57  ;;  %vm140_vm9 = vcmp.eq.s32.totalorder %v136_v54, %v138_v53 }
 0x1df   :  { %325 = vrot.lane.b32.xlu0 %v320_v55, %s2088_s14  ;;  %605 = vrot.lane.b32.xlu1 %v603_v58, %s2087_s3 }
 0x1e3   :  { %608 = vrot.lane.b32.xlu0 %v603_v58, %s2088_s14  ;;  %611 = vrot.lane.b32.xlu1 %v603_v58, %s2086_s2 }
 0x24d   :  { %v329_v59 = vpop.permute.xlu1 %328  ;;  %v323_v60 = vpop.permute.xlu0 %322 }
 0x24e   :  { %v332_v61 = vsel %vm331_vm2, %v320_v55, %v323_v60 }
 0x251   :  { %v326_v62 = vpop.permute.xlu0 %325  ;;  %v606_v63 = vpop.permute.xlu1 %605 }
 0x252   :  { %v334_v1 = vsel %vm333_vm3, %v332_v61, %v326_v62  ;;  %v614_v4 = vsel %vm331_vm2, %v603_v58, %v606_v63  ;;  %v1749_v62 = vsel %vm140_vm9, 1.0, %v2084_v0 }
 0x253   :  { %v336_v3 = vsel %vm335_vm4, %v334_v1, %v329_v59  ;;  %v2288_v59 = vsel %vm139_vm8, 1.0, %v2084_v0 }
 0x254   :  { %1887 = vmatpush3.msk.msra.mxu1 %vm341_vm5, %v336_v3  ;;  %415 = vxpose.xlu0.b32.start.end [1/1] (short) (narrow) %v336_v3, 16 }
 0x255   :  { %1889 = vmatmul.mubr.msk.f32.vlgmr.msra.gmra.mxu1 %vm337_vm6, %v311_v2  ;;  %v609_v5 = vpop.permute.xlu0 %608  ;;  %v612_v6 = vpop.permute.xlu1 %611 }
 0x256   :  { %v615_v9 = vsel %vm333_vm3, %v614_v4, %v609_v5 }
 0x257   :  { %v616_v10 = vsel %vm335_vm4, %v615_v9, %v612_v6 }
 0x258   :  { %690 = vxpose.xlu1.b32.start.end [1/1] (short) (narrow) %v616_v10, 16 }
 0x2d0   :  { %v431_v11 = vpop.trf.xlu0 }
 0x2d1   :  { %1893 = vmatprep.mubr.msk.f32.mxu1 %vm337_vm6, %v431_v11 }
 0x2d4   :  { %v432_v13 = vpop.trf.xlu0  ;;  %v706_v15 = vpop.trf.xlu1 }
 0x2d8   :  { %v707_v22 = vpop.trf.xlu1 }
 0x315   :  { %v411_v12 = vpop.f32.mrf.mxu1 }
 0x316   :  { %1891 = vmatprep.subr.msk.mxu1 %vm341_vm5, %v411_v12 }
 0x317   :  { %v1890_v14 = vpop.f32.mrf.mxu1  ;;  %1892 = vmatpush3.msk.msra.mxu1 %vm341_vm5, %v411_v12 }
 0x318   :  { %1894 = vmatmul.mubr.msk.f32.vlgmr.msra.gmra.mxu1 %vm337_vm6, %v432_v13  ;;  %1896 = vmatprep.subr.mxu1 %v2084_v0 }
 0x319   :  { %1897 = vmatpush3.msk.msra.mxu1 %vm341_vm5, %v616_v10  ;;  %1898 = vmatprep.mubr.msk.f32.mxu1 %vm2085_vm0, %v2084_v0 }
 0x31c   :  { %1899 = vmatmul.mubr.msk.f32.vlgmr.msra.gmra.mxu1 %vm337_vm6, %v311_v2 }
 0x31d   :  { %1903 = vmatprep.mubr.msk.f32.mxu1 %vm337_vm6, %v706_v15 }
 0x3d8   :  { %v1895_v16 = vpop.f32.mrf.mxu1 }
 0x3d9   :  { %v532_v17 = vmul.f32 0.35355338, %v1895_v16 }
 0x3da   :  { %v522_v18 = vpop.f32.mrf.mxu1 }
 0x3db   :  { %v531_v19 = vmul.f32 0.35355338, %v522_v18  ;;  %v537_v20 = vsel %vm533_vm7, %v532_v17, -inf }
 0x3dc   :  { %538 = vmax.xlane.f32.xlu1 %v537_v20  ;;  %v686_v21 = vpop.f32.mrf.mxu1 }
 0x3dd   :  { %1901 = vmatprep.subr.msk.mxu1 %vm341_vm5, %v686_v21  ;;  %v534_v23 = vsel %vm533_vm7, %v531_v19, -inf }
 0x3de   :  { %535 = vmax.xlane.f32.xlu0 %v534_v23  ;;  %v1900_v24 = vpop.f32.mrf.mxu1  ;;  %1902 = vmatpush3.msk.msra.mxu1 %vm341_vm5, %v686_v21 }
 0x3df   :  { %1904 = vmatmul.mubr.msk.f32.vlgmr.msra.gmra.mxu1 %vm337_vm6, %v707_v22  ;;  %1918 = vmatprep.subr.bf16.mxu1 %v2084_v0 }
 0x3e0   :  { %1926 = vmatprep.mubr.msk.bf16.mxu1 %vm2085_vm0, %v2084_v0 }
 0x465   :  { %v539_v30 = vpop.xlane.xlu1 %538 }
 0x466   :  { %v541_v31 = vsub.f32 %v532_v17, %v539_v30 }
 0x467   :  { %v536_v25 = vpop.xlane.xlu0 %535 }
 0x468   :  { %v540_v26 = vsub.f32 %v531_v19, %v536_v25  ;;  %v544_v32 = vmul.f32 1.442695, %v541_v31  ;;  %v1999_v25 = vld [vmem:[%s2468_s5 + $0x18] sm:$0xff]  }
 0x469   :  { %1907 = vmatpush3.bf16.msra.mxu0 %v1999_v25  ;;  %v2007_v25 = vld [vmem:[%s2471_s8 + $0x8] sm:$0xff]  }
 0x46a   :  { %v542_v27 = vmul.f32 1.442695, %v540_v26  ;;  %1908 = vmatprep.subr.bf16.mxu0 %v2084_v0 }
 0x46c   :  { %2021 = vpow2.f32 %v542_v27 }
 0x46d   :  { %2023 = vpow2.f32 %v544_v32 }
 0x479   :  { %v2022_v28 = vpop.eup %2021 }
 0x47a   :  { %v546_v29 = vsel %vm533_vm7, %v2022_v28, 0.0  ;;  %v2024_v40 = vpop.eup %2023 }
 0x47b   :  { %547 = vadd.xlane.f32.xlu1 %v546_v29  ;;  %v549_v41 = vsel %vm533_vm7, %v2024_v40, 0.0 }
 0x49f   :  { %v1905_v33 = vpop.f32.mrf.mxu1 }
 0x4a0   :  { %v807_v36 = vmul.f32 0.35355338, %v1905_v33 }
 0x4a1   :  { %v797_v34 = vpop.f32.mrf.mxu1 }
 0x4a2   :  { %v806_v35 = vmul.f32 0.35355338, %v797_v34  ;;  %v811_v38 = vsel %vm533_vm7, %v807_v36, -inf }
 0x4a4   :  { %v808_v37 = vsel %vm533_vm7, %v806_v35, -inf }
 0x4a5   :  { %809 = vmax.xlane.f32.xlu0 %v808_v37 }
 0x4a9   :  { %812 = vmax.xlane.f32.xlu0 %v811_v38 }
 0x4ad   :  { %550 = vadd.xlane.f32.xlu0 %v549_v41 }
 0x504   :  { %v548_v43 = vpop.xlane.xlu1 %547 }
 0x505   :  { %2025 = vrcp.f32 %v548_v43 }
 0x512   :  { %v2026_v55 = vpop.eup %2025 }
 0x513   :  { %v553_v58 = vmul.f32 %v2026_v55, %v2022_v28 }
 0x515   :  { %v556_v1 = vmul.f32 %v2288_v59, %v553_v58 }
 0x517   :  { %v558_v4 = vsel %vm533_vm7, %v556_v1, 0.0 }
 0x52e   :  { %v810_v42 = vpop.xlane.xlu0 %809 }
 0x52f   :  { %v814_v45 = vsub.f32 %v806_v35, %v810_v42 }
 0x531   :  { %v816_v46 = vmul.f32 1.442695, %v814_v45 }
 0x532   :  { %v813_v47 = vpop.xlane.xlu0 %812 }
 0x533   :  { %2027 = vpow2.f32 %v816_v46  ;;  %v815_v48 = vsub.f32 %v807_v36, %v813_v47 }
 0x535   :  { %v818_v49 = vmul.f32 1.442695, %v815_v48 }
 0x536   :  { %v551_v50 = vpop.xlane.xlu0 %550 }
 0x537   :  { %2029 = vpow2.f32 %v818_v49 }
 0x538   :  { %2031 = vrcp.f32 %v551_v50  ;;  %v2000_v50 = vld [vmem:[%s2468_s5 + $0x10] sm:$0xff]  }
 0x539   :  { %1909 = vmatpush3.bf16.msra.mxu0 %v2000_v50 }
 0x53a   :  { %1910 = vmatprep.subr.bf16.mxu0 %v2084_v0 }
 0x53d   :  { %1911 = vmatpush3.bf16.msra.mxu0 %v2001_v51 }
 0x53e   :  { %1912 = vmatprep.subr.bf16.mxu0 %v2084_v0 }
 0x540   :  { %v2028_v56 = vpop.eup %2027 }
 0x541   :  { %v820_v57 = vsel %vm533_vm7, %v2028_v56, 0.0 }
 0x542   :  { %821 = vadd.xlane.f32.xlu1 %v820_v57 }
 0x544   :  { %v2030_v60 = vpop.eup %2029 }
 0x545   :  { %v2032_v61 = vpop.eup %2031  ;;  %v823_v63 = vsel %vm533_vm7, %v2030_v60, 0.0 }
 0x546   :  { %v555_v2 = vmul.f32 %v2032_v61, %v2024_v40  ;;  %824 = vadd.xlane.f32.xlu0 %v823_v63  ;;  %v2004_v61 = vld [vmem:[%s2469_s6 + $0x10] sm:$0xff]  }
 0x548   :  { %v557_v3 = vmul.f32 %v1749_v62, %v555_v2 }
 0x54a   :  { %v559_v5 = vsel %vm533_vm7, %v557_v3, 0.0 }
 0x54b   :  { %v560_v6 = vadd.f32 %v559_v5, %v558_v4  ;;  %v2333_v4 = vsub.s32 0, %v2282_v52 }
 0x54d   :  { %v561_v9 = vrot.slane %v560_v6, 4 }
 0x54f   :  { %v562_v10 = vadd.f32 %v561_v9, %v560_v6 }
 0x551   :  { %v563_v11 = vrot.slane %v562_v10, 2 }
 0x553   :  { %v564_v12 = vadd.f32 %v563_v11, %v562_v10 }
 0x555   :  { %v565_v13 = vrot.slane %v564_v12, 1 }
 0x557   :  { %v566_v14 = vadd.f32 %v565_v13, %v564_v12 }
 0x559   :  { %v568_v15 = vmul.f32 0.044715, %v566_v14  ;;  %v567_v21 = vmul.f32 0.5, %v566_v14 }
 0x55b   :  { %v569_v16 = vmul.f32 %v568_v15, %v566_v14 }
 0x55d   :  { %v570_v17 = vmul.f32 %v569_v16, %v566_v14 }
 0x55f   :  { %v571_v18 = vadd.f32 %v570_v17, %v566_v14 }
 0x561   :  { %v572_v19 = vmul.f32 0.7978846, %v571_v18  ;;  %v2005_v18 = vld [vmem:[%s2469_s6 + $0x8] sm:$0xff]  }
 0x563   :  { %2033 = vtanh.f32 %v572_v19  ;;  %v2006_v19 = vld [vmem:[%s2469_s6] sm:$0xff]  }
 0x570   :  { %v2034_v20 = vpop.eup %2033 }
 0x571   :  { %v574_v22 = vadd.f32 1.0, %v2034_v20 }
 0x573   :  { %v575_v23 = vmul.f32 %v574_v22, %v567_v21 }
 0x575   :  { %v2295_v24 = vadd.f32 1.0, %v575_v23 }
 0x577   :  { %578 = vrot.lane.b32.xlu1 %v2295_v24, %s2089_s4 }
 0x57b   :  { %581 = vrot.lane.b32.xlu1 %v2295_v24, %s2090_s17 }
 0x5cb   :  { %v822_v26 = vpop.xlane.xlu1 %821 }
 0x5cc   :  { %2035 = vrcp.f32 %v822_v26  ;;  %v2008_v26 = vld [vmem:[%s2472_s9 + $0x8] sm:$0xff]  }
 0x5cf   :  { %v825_v27 = vpop.xlane.xlu0 %824 }
 0x5d0   :  { %2037 = vrcp.f32 %v825_v27 }
 0x5d9   :  { %v2036_v28 = vpop.eup %2035 }
 0x5da   :  { %v827_v29 = vmul.f32 %v2036_v28, %v2028_v56  ;;  %v2002_v56 = vld [vmem:[%s2468_s5] sm:$0xff]   ;;  %s2091_s5 = smov 48  }
 0x5db   :  { %1913 = vmatpush3.bf16.msra.mxu0 %v2002_v56  ;;  %v1775_v28 = vld [vmem:[%s2470_s7] ss:$0 sm:$0xff]  ;;  %s2092_s7 = smov 120  }
 0x5dc   :  { %v830_v31 = vmul.f32 %v2288_v59, %v827_v29  ;;  %1930 = vmatprep.subr.bf16.mxu0 %v2084_v0 }
 0x5dd   :  { %v2038_v30 = vpop.eup %2037 }
 0x5de   :  { %v829_v32 = vmul.f32 %v2038_v30, %v2030_v60  ;;  %v832_v34 = vsel %vm533_vm7, %v830_v31, 0.0  ;;  %v2003_v60 = vld [vmem:[%s2469_s6 + $0x18] sm:$0xff]  }
 0x5df   :  { %1919 = vmatpush3.bf16.msra.mxu1 %v2003_v60 }
 0x5e0   :  { %v831_v33 = vmul.f32 %v1749_v62, %v829_v32  ;;  %1920 = vmatprep.subr.bf16.mxu1 %v2084_v0 }
 0x5e2   :  { %v833_v35 = vsel %vm533_vm7, %v831_v33, 0.0 }
 0x5e3   :  { %v834_v36 = vadd.f32 %v833_v35, %v832_v34  ;;  %1921 = vmatpush3.bf16.msra.mxu1 %v2004_v61 }
 0x5e4   :  { %1922 = vmatprep.subr.bf16.mxu1 %v2084_v0 }
 0x5e5   :  { %v835_v37 = vrot.slane %v834_v36, 4 }
 0x5e7   :  { %v836_v38 = vadd.f32 %v835_v37, %v834_v36  ;;  %1923 = vmatpush3.bf16.msra.mxu1 %v2005_v18 }
 0x5e8   :  { %1924 = vmatprep.subr.bf16.mxu1 %v2084_v0 }
 0x5e9   :  { %v837_v40 = vrot.slane %v836_v38, 2  ;;  %v579_v62 = vpop.permute.xlu1 %578 }
 0x5ea   :  { %v587_v5 = vsel %vm533_vm7, %v2295_v24, %v579_v62 }
 0x5eb   :  { %v838_v41 = vadd.f32 %v837_v40, %v836_v38  ;;  %1925 = vmatpush3.bf16.msra.mxu1 %v2006_v19 }
 0x5ec   :  { %1938 = vmatprep.subr.bf16.mxu1 %v2084_v0 }
 0x5ed   :  { %v839_v42 = vrot.slane %v838_v41, 1  ;;  %v582_v63 = vpop.permute.xlu1 %581 }
 0x5ee   :  { %v589_v6 = vsel %vm588_vm10, %v587_v5, %v582_v63 }
 0x5ef   :  { %v840_v43 = vadd.f32 %v839_v42, %v838_v41 }
 0x5f1   :  { %v842_v45 = vmul.f32 0.044715, %v840_v43  ;;  %v841_v54 = vmul.f32 0.5, %v840_v43 }
 0x5f3   :  { %v843_v46 = vmul.f32 %v842_v45, %v840_v43 }
 0x5f5   :  { %v844_v47 = vmul.f32 %v843_v46, %v840_v43 }
 0x5f7   :  { %v845_v48 = vadd.f32 %v844_v47, %v840_v43 }
 0x5f9   :  { %v846_v49 = vmul.f32 0.7978846, %v845_v48 }
 0x5fb   :  { %2039 = vtanh.f32 %v846_v49 }
 0x608   :  { %v2040_v53 = vpop.eup %2039 }
 0x609   :  { %v848_v55 = vadd.f32 1.0, %v2040_v53 }
 0x60b   :  { %v849_v57 = vmul.f32 %v848_v55, %v841_v54 }
 0x60d   :  { %v850_v58 = vadd.f32 1.0, %v849_v57 }
 0x60f   :  { %855 = vrot.lane.b32.xlu1 %v850_v58, %s2090_s17  ;;  %852 = vrot.lane.b32.xlu0 %v850_v58, %s2089_s4 }
 0x613   :  { %858 = vrot.lane.b32.xlu1 %v850_v58, %s2091_s5  ;;  %584 = vrot.lane.b32.xlu0 %v2295_v24, %s2091_s5 }
 0x681   :  { %v856_v1 = vpop.permute.xlu1 %855  ;;  %v853_v2 = vpop.permute.xlu0 %852 }
 0x682   :  { %v861_v3 = vsel %vm533_vm7, %v850_v58, %v853_v2 }
 0x683   :  { %v862_v10 = vsel %vm588_vm10, %v861_v3, %v856_v1 }
 0x685   :  { %v859_v9 = vpop.permute.xlu1 %858  ;;  %v585_v11 = vpop.permute.xlu0 %584 }
 0x686   :  { %v863_v12 = vsel %vm590_vm11, %v862_v10, %v859_v9  ;;  %v591_v13 = vsel %vm590_vm11, %v589_v6, %v585_v11 }
 0x687   :  { %v867_v14 = vrot.slane %v863_v12, %v2333_v4  ;;  %v595_v15 = vrot.slane %v591_v13, %v2333_v4 }
 0x689   :  { %v869_v16 = vmul.f32 %v867_v14, %v2243_v44  ;;  %v868_v52 = vmul.f32 %v595_v15, %v2239_v39 }
 0x68b   :  { %v878_v17 = vpack.c.bf16 %v869_v16, %v868_v52 }
 0x68d   :  { %1915 = vmatmul.mubr.msk.bf16.vlgmr.msra.gmra.mxu0 %vm89_vm1, %v878_v17 }
 0x68e   :  { %1934 = vmatprep.mubr.msk.bf16.mxu0 %vm2085_vm0, %v2084_v0  ;;  %1931 = vmatpush3.bf16.msra.mxu0 %v2007_v25 }
 0x68f   :  { %1932 = vmatprep.subr.bf16.mxu0 %v2084_v0 }
 0x74d   :  { %v940_v39 = vpop.f32.mrf.mxu0 }
 0x74e   :  { %v947_v21 = vadd.f32 %v940_v39, %v2193_v7  ;;  %v2009_v7 = vld [vmem:[%s2471_s8] sm:$0xff]   ;;  %s2093_s8 = smov 104  }
 0x74f   :  { %v1916_v44 = vpop.f32.mrf.mxu0  ;;  %1933 = vmatpush3.bf16.msra.mxu0 %v2009_v7 }
 0x750   :  { %1946 = vmatprep.subr.mxu0 %v2084_v0 }
 0x751   :  { %v943_v20 = vpop.f32.mrf.mxu0 }
 0x752   :  { %v948_v22 = vadd.f32 %v943_v20, %v2198_v8  ;;  %v2010_v8 = vld [vmem:[%s2472_s9] sm:$0xff]   ;;  %s2094_s9 = smov 8  }
 0x753   :  { %v1917_v23 = vpop.f32.mrf.mxu0  ;;  %v1167_v20 = vld [vmem:[#allocation2] sm:$0xf] }
 0x754   :  { %v957_v24 = vpack.c.bf16 %v948_v22, %v947_v21 }
 0x756   :  { %1927 = vmatmul.mubr.msk.bf16.vlgmr.msra.gmra.mxu1 %vm89_vm1, %v957_v24 }
 0x757   :  { %1942 = vmatprep.mubr.msk.bf16.mxu1 %vm2085_vm0, %v2084_v0  ;;  %1939 = vmatpush3.bf16.msra.mxu1 %v2008_v26 }
 0x758   :  { %1940 = vmatprep.subr.bf16.mxu1 %v2084_v0 }
 0x75b   :  { %1941 = vmatpush3.bf16.msra.mxu1 %v2010_v8 }
 0x75c   :  { %1966 = vmatprep.subr.bf16.mxu1 %v2084_v0 }
 0x816   :  { %v1026_v27 = vpop.f32.mrf.mxu1 }
 0x817   :  { %v2378_v31 = vadd.f32 %v1775_v28, %v1026_v27 }
 0x818   :  { %v1928_v29 = vpop.f32.mrf.mxu1 }
 0x81a   :  { %v1029_v30 = vpop.f32.mrf.mxu1 }
 0x81b   :  { %v2380_v32 = vadd.f32 %v1775_v28, %v1029_v30 }
 0x81c   :  { %v1929_v33 = vpop.f32.mrf.mxu1 }
 0x81d   :  { %v1037_v34 = vpack.c.bf16 %v2380_v32, %v2378_v31 }
 0x81f   :  { %1935 = vmatmul.mubr.msk.bf16.vlgmr.msra.gmra.mxu0 %vm588_vm10, %v1037_v34  ;;  %1943 = vmatmul.mubr.msk.bf16.vlgmr.msra.gmra.mxu1 %vm588_vm10, %v1037_v34 }
 0x820   :  { %1948 = vmatprep.mubr.msk.f32.mxu0 %vm2085_vm0, %v2084_v0  ;;  %1970 = vmatprep.mubr.msk.bf16.mxu1 %vm2085_vm0, %v2084_v0 }
 0x8df   :  { %v1087_v35 = vpop.f32.mrf.mxu0  ;;  %v1144_v36 = vpop.f32.mrf.mxu1 }
 0x8e0   :  { %v1151_v37 = vsub.f32 0.0, %v1144_v36 }
 0x8e1   :  { %v1936_v38 = vpop.f32.mrf.mxu0  ;;  %v1944_v40 = vpop.f32.mrf.mxu1 }
 0x8e2   :  { %v1153_v41 = vmul.f32 1.442695, %v1151_v37 }
 0x8e3   :  { %v1090_v42 = vpop.f32.mrf.mxu0  ;;  %v1147_v43 = vpop.f32.mrf.mxu1 }
 0x8e4   :  { %2041 = vpow2.f32 %v1153_v41  ;;  %v1152_v45 = vsub.f32 0.0, %v1147_v43 }
 0x8e5   :  { %v1937_v46 = vpop.f32.mrf.mxu0  ;;  %v1945_v47 = vpop.f32.mrf.mxu1 }
 0x8e6   :  { %v1155_v48 = vmul.f32 1.442695, %v1152_v45 }
 0x8e8   :  { %2043 = vpow2.f32 %v1155_v48 }
 0x8f1   :  { %v2042_v49 = vpop.eup %2041 }
 0x8f2   :  { %v1157_v50 = vadd.f32 1.0, %v2042_v49 }
 0x8f4   :  { %2045 = vrcp.f32 %v1157_v50 }
 0x8f5   :  { %v2044_v51 = vpop.eup %2043 }
 0x8f6   :  { %v1158_v53 = vadd.f32 1.0, %v2044_v51 }
 0x8f8   :  { %2047 = vrcp.f32 %v1158_v53 }
 0x901   :  { %v2046_v54 = vpop.eup %2045 }
 0x902   :  { %v1163_v55 = vmul.f32 %v2046_v54, %v1087_v35 }
 0x904   :  { %v2391_v56 = vadd.f32 %v1163_v55, %v2378_v31 }
 0x905   :  { %v2048_v57 = vpop.eup %2047 }
 0x906   :  { %v1168_v58 = vsel %vm588_vm10, %v2391_v56, 0.0  ;;  %v1164_v60 = vmul.f32 %v2048_v57, %v1090_v42 }
 0x907   :  { %v1169_v61 = vrot.slane %v1168_v58, 4 }
 0x908   :  { %v2396_v62 = vadd.f32 %v1164_v60, %v2380_v32 }
 0x909   :  { %v1170_v63 = vadd.f32 %v1169_v61, %v1168_v58 }
 0x90a   :  { %v1422_v1 = vsel %vm588_vm10, %v2396_v62, 0.0 }
 0x90b   :  { %v1171_v2 = vrot.slane %v1170_v63, 2  ;;  %v1423_v3 = vrot.slane %v1422_v1, 4 }
 0x90d   :  { %v1172_v5 = vadd.f32 %v1171_v2, %v1170_v63  ;;  %v1424_v6 = vadd.f32 %v1423_v3, %v1422_v1 }
 0x90f   :  { %v1173_v9 = vrot.slane %v1172_v5, 1  ;;  %v1425_v10 = vrot.slane %v1424_v6, 2 }
 0x911   :  { %v1174_v11 = vadd.f32 %v1173_v9, %v1172_v5  ;;  %v1426_v12 = vadd.f32 %v1425_v10, %v1424_v6 }
 0x913   :  { %v1175_v13 = vmul.f32 0.125, %v1174_v11  ;;  %v1427_v14 = vrot.slane %v1426_v12, 1 }
 0x915   :  { %1180 = vrot.lane.b32.xlu1 %v1175_v13, %s2087_s3  ;;  %1177 = vrot.lane.b32.xlu0 %v1175_v13, %s2092_s7  ;;  %v1428_v15 = vadd.f32 %v1427_v14, %v1426_v12 }
 0x917   :  { %v1429_v16 = vmul.f32 0.125, %v1428_v15 }
 0x919   :  { %1183 = vrot.lane.b32.xlu0 %v1175_v13, %s2093_s8  ;;  %1431 = vrot.lane.b32.xlu1 %v1429_v16, %s2092_s7 }
 0x91d   :  { %1434 = vrot.lane.b32.xlu0 %v1429_v16, %s2087_s3  ;;  %1437 = vrot.lane.b32.xlu1 %v1429_v16, %s2093_s8 }
 0x987   :  { %v1181_v52 = vpop.permute.xlu1 %1180  ;;  %v1178_v17 = vpop.permute.xlu0 %1177 }
 0x988   :  { %v1186_v18 = vsel %vm331_vm2, %v1175_v13, %v1178_v17 }
 0x989   :  { %v1187_v19 = vsel %vm333_vm3, %v1186_v18, %v1181_v52 }
 0x98b   :  { %v1184_v39 = vpop.permute.xlu0 %1183  ;;  %v1432_v44 = vpop.permute.xlu1 %1431 }
 0x98c   :  { %v1188_v21 = vsel %vm335_vm4, %v1187_v19, %v1184_v39  ;;  %v1440_v22 = vsel %vm331_vm2, %v1429_v16, %v1432_v44 }
 0x98d   :  { %1947 = vmatpush3.msk.msra.mxu0 %vm341_vm5, %v1188_v21  ;;  %1265 = vxpose.xlu0.b32.start.end [1/1] (short) (narrow) %v1188_v21, 8 }
 0x98e   :  { %1949 = vmatmul.mubr.msk.f32.vlgmr.msra.gmra.mxu0 %vm337_vm6, %v1167_v20  ;;  %1951 = vmatprep.subr.mxu0 %v2084_v0 }
 0x98f   :  { %v1435_v23 = vpop.permute.xlu0 %1434  ;;  %v1438_v24 = vpop.permute.xlu1 %1437  ;;  %1953 = vmatprep.mubr.msk.f32.mxu0 %vm2085_vm0, %v2084_v0 }
 0x990   :  { %v1441_v25 = vsel %vm333_vm3, %v1440_v22, %v1435_v23 }
 0x991   :  { %v1442_v26 = vsel %vm335_vm4, %v1441_v25, %v1438_v24 }
 0x992   :  { %1516 = vxpose.xlu1.b32.start.end [1/1] (short) (narrow) %v1442_v26, 8 }
 0xa09   :  { %v1281_v7 = vpop.trf.xlu0 }
 0xa0e   :  { %v1532_v34 = vpop.trf.xlu1 }
 0xa4e   :  { %v1261_v8 = vpop.f32.mrf.mxu0 }
 0xa4f   :  { %1952 = vmatpush3.msk.msra.mxu0 %vm341_vm5, %v1261_v8 }
 0xa50   :  { %1954 = vmatmul.mubr.msk.f32.vlgmr.msra.gmra.mxu0 %vm337_vm6, %v1281_v7  ;;  %1956 = vmatprep.subr.mxu0 %v2084_v0  ;;  %v1950_v27 = vpop.f32.mrf.mxu0 }
 0xa51   :  { %1957 = vmatpush3.msk.msra.mxu0 %vm341_vm5, %v1442_v26  ;;  %1958 = vmatprep.mubr.msk.f32.mxu0 %vm2085_vm0, %v2084_v0 }
 0xa52   :  { %1961 = vmatprep.subr.mxu0 %v2084_v0 }
 0xa54   :  { %1959 = vmatmul.mubr.msk.f32.vlgmr.msra.gmra.mxu0 %vm337_vm6, %v1167_v20 }
 0xa55   :  { %1963 = vmatprep.mubr.msk.f32.mxu0 %vm2085_vm0, %v2084_v0 }
 0xb10   :  { %v1369_v28 = vpop.f32.mrf.mxu0 }
 0xb11   :  { %v1373_v29 = vmul.f32 0.35355338, %v1369_v28 }
 0xb12   :  { %v1955_v30 = vpop.f32.mrf.mxu0 }
 0xb13   :  { %v1375_v33 = vsel %vm1374_vm12, %v1373_v29, -inf }
 0xb14   :  { %1376 = vmax.xlane.f32.xlu0 %v1375_v33  ;;  %v1512_v35 = vpop.f32.mrf.mxu0 }
 0xb15   :  { %1962 = vmatpush3.msk.msra.mxu0 %vm341_vm5, %v1512_v35 }
 0xb16   :  { %1964 = vmatmul.mubr.msk.f32.vlgmr.msra.gmra.mxu0 %vm337_vm6, %v1532_v34  ;;  %v1960_v36 = vpop.f32.mrf.mxu0  ;;  %v2012_v34 = vld [vmem:[%s2474_s11] sm:$0xff]  }
 0xb9d   :  { %v1377_v37 = vpop.xlane.xlu0 %1376 }
 0xb9e   :  { %v1378_v38 = vsub.f32 %v1373_v29, %v1377_v37  ;;  %v2011_v29 = vld [vmem:[%s2474_s11 + $0x8] sm:$0xff]  }
 0xb9f   :  { %1967 = vmatpush3.bf16.msra.mxu1 %v2011_v29 }
 0xba0   :  { %v1379_v40 = vmul.f32 1.442695, %v1378_v38  ;;  %1968 = vmatprep.subr.bf16.mxu1 %v2084_v0 }
 0xba2   :  { %2049 = vpow2.f32 %v1379_v40 }
 0xba3   :  { %1969 = vmatpush3.bf16.msra.mxu1 %v2012_v34 }
 0xbaf   :  { %v2050_v41 = vpop.eup %2049 }
 0xbb0   :  { %v1381_v42 = vsel %vm1374_vm12, %v2050_v41, 0.0 }
 0xbb1   :  { %1382 = vadd.xlane.f32.xlu0 %v1381_v42 }
 0xbd6   :  { %v1620_v43 = vpop.f32.mrf.mxu0 }
 0xbd7   :  { %v1624_v45 = vmul.f32 0.35355338, %v1620_v43 }
 0xbd8   :  { %v1965_v46 = vpop.f32.mrf.mxu0 }
 0xbd9   :  { %v1625_v47 = vsel %vm1374_vm12, %v1624_v45, -inf }
 0xbda   :  { %1626 = vmax.xlane.f32.xlu1 %v1625_v47 }
 0xc3a   :  { %v1383_v48 = vpop.xlane.xlu0 %1382 }
 0xc3b   :  { %2051 = vrcp.f32 %v1383_v48 }
 0xc48   :  { %v2052_v49 = vpop.eup %2051 }
 0xc49   :  { %v1385_v50 = vmul.f32 %v2052_v49, %v2050_v41 }
 0xc4b   :  { %v1386_v51 = vmul.f32 %v2288_v59, %v1385_v50 }
 0xc4d   :  { %v1387_v53 = vsel %vm1374_vm12, %v1386_v51, 0.0 }
 0xc4e   :  { %v1388_v54 = vrot.slane %v1387_v53, 4 }
 0xc50   :  { %v1389_v55 = vadd.f32 %v1388_v54, %v1387_v53 }
 0xc52   :  { %v1390_v57 = vrot.slane %v1389_v55, 2 }
 0xc54   :  { %v1391_v58 = vadd.f32 %v1390_v57, %v1389_v55 }
 0xc56   :  { %v1392_v60 = vrot.slane %v1391_v58, 1 }
 0xc58   :  { %v1393_v61 = vadd.f32 %v1392_v60, %v1391_v58 }
 0xc5a   :  { %v1395_v63 = vmul.f32 0.044715, %v1393_v61  ;;  %v1394_v12 = vmul.f32 0.5, %v1393_v61 }
 0xc5c   :  { %v1396_v1 = vmul.f32 %v1395_v63, %v1393_v61 }
 0xc5e   :  { %v1397_v2 = vmul.f32 %v1396_v1, %v1393_v61 }
 0xc60   :  { %v1398_v3 = vadd.f32 %v1397_v2, %v1393_v61 }
 0xc62   :  { %v1399_v5 = vmul.f32 0.7978846, %v1398_v3 }
 0xc63   :  { %v1627_v6 = vpop.xlane.xlu1 %1626 }
 0xc64   :  { %v1628_v9 = vsub.f32 %v1624_v45, %v1627_v6  ;;  %2053 = vtanh.f32 %v1399_v5 }
 0xc66   :  { %v1629_v10 = vmul.f32 1.442695, %v1628_v9 }
 0xc68   :  { %2055 = vpow2.f32 %v1629_v10 }
 0xc71   :  { %v2054_v11 = vpop.eup %2053 }
 0xc72   :  { %v1401_v13 = vadd.f32 1.0, %v2054_v11 }
 0xc74   :  { %v1402_v14 = vmul.f32 %v1401_v13, %v1394_v12 }
 0xc75   :  { %v2056_v15 = vpop.eup %2055 }
 0xc76   :  { %v1631_v16 = vsel %vm1374_vm12, %v2056_v15, 0.0  ;;  %v1403_v52 = vadd.f32 1.0, %v1402_v14 }
 0xc77   :  { %1632 = vadd.xlane.f32.xlu0 %v1631_v16 }
 0xc78   :  { %1405 = vrot.lane.b32.xlu1 %v1403_v52, %s2094_s9 }
 0xc7c   :  { %1408 = vrot.lane.b32.xlu1 %v1403_v52, %s2089_s4 }
 0xcea   :  { %v1406_v37 = vpop.permute.xlu1 %1405 }
 0xceb   :  { %v1414_v42 = vsel %vm1374_vm12, %v1403_v52, %v1406_v37 }
 0xcee   :  { %v1409_v38 = vpop.permute.xlu1 %1408 }
 0xcef   :  { %v1415_v43 = vsel %vm533_vm7, %v1414_v42, %v1409_v38 }
 0xd00   :  { %v1633_v17 = vpop.xlane.xlu0 %1632 }
 0xd01   :  { %2057 = vrcp.f32 %v1633_v17 }
 0xd0e   :  { %v2058_v18 = vpop.eup %2057 }
 0xd0f   :  { %v1635_v19 = vmul.f32 %v2058_v18, %v2056_v15 }
 0xd11   :  { %v1636_v39 = vmul.f32 %v2288_v59, %v1635_v19 }
 0xd13   :  { %v1637_v44 = vsel %vm1374_vm12, %v1636_v39, 0.0 }
 0xd14   :  { %v1638_v20 = vrot.slane %v1637_v44, 4 }
 0xd16   :  { %v1639_v21 = vadd.f32 %v1638_v20, %v1637_v44 }
 0xd18   :  { %v1640_v22 = vrot.slane %v1639_v21, 2 }
 0xd1a   :  { %v1641_v23 = vadd.f32 %v1640_v22, %v1639_v21 }
 0xd1c   :  { %v1642_v24 = vrot.slane %v1641_v23, 1 }
 0xd1e   :  { %v1643_v25 = vadd.f32 %v1642_v24, %v1641_v23 }
 0xd20   :  { %v1645_v26 = vmul.f32 0.044715, %v1643_v25  ;;  %v1644_v30 = vmul.f32 0.5, %v1643_v25 }
 0xd22   :  { %v1646_v7 = vmul.f32 %v1645_v26, %v1643_v25 }
 0xd24   :  { %v1647_v8 = vmul.f32 %v1646_v7, %v1643_v25 }
 0xd26   :  { %v1648_v27 = vadd.f32 %v1647_v8, %v1643_v25 }
 0xd28   :  { %v1649_v28 = vmul.f32 0.7978846, %v1648_v27 }
 0xd2a   :  { %2059 = vtanh.f32 %v1649_v28 }
 0xd37   :  { %v2060_v59 = vpop.eup %2059 }
 0xd38   :  { %v1651_v33 = vadd.f32 1.0, %v2060_v59 }
 0xd3a   :  { %v1652_v35 = vmul.f32 %v1651_v33, %v1644_v30 }
 0xd3c   :  { %v1653_v36 = vadd.f32 1.0, %v1652_v35 }
 0xd3e   :  { %1658 = vrot.lane.b32.xlu1 %v1653_v36, %s2089_s4  ;;  %1655 = vrot.lane.b32.xlu0 %v1653_v36, %s2094_s9 }
 0xd42   :  { %1661 = vrot.lane.b32.xlu1 %v1653_v36, %s2095_s24  ;;  %1411 = vrot.lane.b32.xlu0 %v1403_v52, %s2095_s24 }
 0xdb0   :  { %v1656_v40 = vpop.permute.xlu0 %1655  ;;  %v1659_v0 = vpop.permute.xlu1 %1658 }
 0xdb1   :  { %v1664_v41 = vsel %vm1374_vm12, %v1653_v36, %v1656_v40 }
 0xdb2   :  { %v1665_v45 = vsel %vm533_vm7, %v1664_v41, %v1659_v0 }
 0xdb4   :  { %v1412_v46 = vpop.permute.xlu0 %1411  ;;  %v1662_v47 = vpop.permute.xlu1 %1661 }
 0xdb5   :  { %v1417_v48 = vsel %vm1416_vm13, %v1415_v43, %v1412_v46  ;;  %v1666_v49 = vsel %vm1416_vm13, %v1665_v45, %v1662_v47 }
 0xdb6   :  { %v1421_v50 = vrot.slane %v1417_v48, %v2333_v4  ;;  %v1670_v51 = vrot.slane %v1666_v49, %v2333_v4 }
 0xdb8   :  { %v1671_v53 = vmul.f32 %v1421_v50, %v2391_v56  ;;  %v1672_v54 = vmul.f32 %v1670_v51, %v2396_v62 }
 0xdba   :  { %v1677_v55 = vpack.c.bf16 %v1672_v54, %v1671_v53 }
 0xdbc   :  { %1971 = vmatmul.mubr.msk.bf16.vlgmr.msra.gmra.mxu1 %vm588_vm10, %v1677_v55 }
 0xe7c   :  { %v1727_v57 = vpop.f32.mrf.mxu1 }
 0xe7d   :  { %v1734_v58 = vadd.f32 %v1727_v57, %v2378_v31 }
 0xe7e   :  { %v1972_v60 = vpop.f32.mrf.mxu1 }
 0xe7f   :  { %1736 = vst.msk [vmem:[%s2475_s12] sm:$0xff] %vm588_vm10, %v1734_v58 }
 0xe80   :  { %v1730_v61 = vpop.f32.mrf.mxu1 }
 0xe81   :  { %v1735_v63 = vadd.f32 %v1730_v61, %v2380_v32 }
 0xe82   :  { %v1973_v4 = vpop.f32.mrf.mxu1 }
 0xe83   :  { %1737 = vst.msk [vmem:[%s2475_s12 + $0x8] sm:$0xff] %vm588_vm10, %v1735_v63 }
 0xe84   :  { %1742 = vsyncpa [#allocation3], 1 }

</bundles_post_ra>
